<compile_context>
chip_gen: v7x
topology: tpu7x:2x2x1
jax: 0.10.0
libtpu: 0.0.40
codegen_flags: <defaults>
</compile_context>

<pallas_src>
import jax
import jax.numpy as jnp
from jax.experimental import pallas as pl
from jax.experimental.pallas import tpu as pltpu


# ----------------------------------------------------------------------------
# Static network geometry (RadioML: 128 complex samples, 1 input channel)
# ----------------------------------------------------------------------------
H0 = 128
KC, SC = 5, 5                 # complex_conv1 kernel / stride along H
H1 = (H0 - KC) // SC + 1      # 25 windows (uses samples 0..124)
C1 = 20                       # complex_conv1 output channels
K1, C2 = 5, 40                # conv_1
K2, C3 = 5, 60                # conv_2
K3, C4 = 3, 80                # conv_3
D2 = 40                       # linear_2 out
NCLS = 11                     # linear_3 out (num classes)
NPAD = 128                    # lane-dense padded logits width
R = 32                        # per-sample row slot (>= H1, multiple of 8)
SHRINK = 24                   # total row shrinkage budget (multiple of 8, >= 23)


# ----------------------------------------------------------------------------
# Fused Pallas kernel: whole forward pass for TB samples per grid step.
# Activations are flat (rows, C) arrays; sample s lives in rows [s*R, (s+1)*R).
# After each max-pool the valid-entry stride doubles (1 -> 2 -> 4); convs then
# read their taps at row offsets sigma*t, which are plain contiguous slices.
# ----------------------------------------------------------------------------

def _fwd_kernel(x_ref, cw_ref, w1_ref, w2_ref, w3_ref, wl2_ref, wl3_ref,
                bias_ref, out_ref):
    f32, bf16 = jnp.float32, jnp.bfloat16
    N0 = x_ref.shape[1]                      # TB * R rows per step

    def conv_relu(h, w_ref, bias_row, cout, k, sigma, n_out):
        # h: (rows, Cin) f32 ; w_ref: (k, Cin, Cout) bf16 (BN pre-folded).
        hb = h.astype(bf16)                                  # cast once per layer
        acc = jnp.dot(hb[0:n_out, :], w_ref[0], preferred_element_type=f32)
        for t in range(1, k):                                # single f32 acc chain
            acc = acc + jnp.dot(hb[sigma * t: sigma * t + n_out, :], w_ref[t],
                                preferred_element_type=f32)
        return jnp.maximum(acc + bias_ref[bias_row:bias_row + 1, :cout], 0.0)

    # --- complex_conv1 (stride == kernel): re/im fused into ONE matmul (f32 for
    #     parity on raw IQ; K=5 so the f32 MXU cost is negligible).
    x2 = x_ref[...].reshape(2 * N0, KC)                      # trivial 8-aligned merge
    z = jnp.dot(x2, cw_ref[...], preferred_element_type=f32)  # (2*N0, C1)
    zre, zim = z[:N0], z[N0:]

    # --- proj1 (ReLU4Dsp) + SURE magnitude readout, fused; result >= 0 so the
    #     subsequent nn.ReLU is a no-op.
    # TODO(synk): shrinkage_layers.{ComplexConv2Deffangle4Dxy,ReLU4Dsp,SURE_pure4D}
    # sources unavailable; approximated as weighted complex conv + per-channel
    # magnitude soft-threshold.  SURE losses (labels path) omitted.
    mag = jnp.sqrt(zre * zre + zim * zim + 1e-12)
    h = jnp.maximum(mag - bias_ref[0:1, :C1], 0.0)           # (N0, C1) f32, sigma=1

    # Row counts after each stage (rows drop only at the tail -> last sample's
    # unused slot absorbs all of it).
    N1 = N0 - (K1 - 1) * 1        # conv_1  (sigma=1, offsets 0..4)
    N2 = N1 - 1                   # mp_1    (shift 1)   -> sigma becomes 2
    N3 = N2 - (K2 - 1) * 2        # conv_2  (sigma=2, offsets 0..8)
    N4 = N3 - 2                   # mp_2    (shift 2)   -> sigma becomes 4
    N5 = N4 - (K3 - 1) * 4        # conv_3  (sigma=4, offsets 0..8)

    # --- conv_1 / bn_1 / relu / mp_1
    h = conv_relu(h, w1_ref, 1, C2, K1, 1, N1)               # (N1, C2)
    h = jnp.maximum(h[0:N2, :], h[1:1 + N2, :])              # VPU max-pool
    # --- conv_2 / bn_2 / relu / mp_2
    h = conv_relu(h, w2_ref, 2, C3, K2, 2, N3)               # (N3, C3)
    h = jnp.maximum(h[0:N4, :], h[2:2 + N4, :])
    # --- conv_3 / bn_3 / relu
    h = conv_relu(h, w3_ref, 3, C4, K3, 4, N5)               # (N5, C4)

    # --- linear_2 + relu, linear_3 (classifier zero-padded to 128 lanes)
    h = jnp.maximum(jnp.dot(h.astype(bf16), wl2_ref[...],
                            preferred_element_type=f32)
                    + bias_ref[4:5, :D2], 0.0)                # (N5, D2)
    logits = jnp.dot(h.astype(bf16), wl3_ref[...],
                     preferred_element_type=f32) + bias_ref[5:6, :]  # (N5, NPAD)

    # Lane- and sublane-dense store; valid rows (one per sample, at s*R) are
    # extracted on the host.
    out_ref[...] = logits[: out_ref.shape[0]]


# ----------------------------------------------------------------------------
# Deterministic parameter initialization (shapes from the module's __init__)
# ----------------------------------------------------------------------------

def init_params(key):
    ks = jax.random.split(key, 20)
    p = {}
    # complex_conv1: 1 -> 20 channels, kernel (5,1), stride (5,1); wFM weights
    p["cconv_w"] = jax.nn.softmax(jax.random.normal(ks[0], (C1, KC)), axis=-1)
    # proj1 (ReLU4Dsp(20)): per-channel shrinkage threshold
    p["proj_thr"] = 0.1 * jax.random.uniform(ks[1], (C1,))

    def conv_init(kw, kb, cout, cin, k):
        s = 1.0 / jnp.sqrt(cin * k)
        return (jax.random.uniform(kw, (cout, cin, k), jnp.float32, -s, s),
                jax.random.uniform(kb, (cout,), jnp.float32, -s, s))

    p["conv1_w"], p["conv1_b"] = conv_init(ks[2], ks[3], C2, C1, K1)
    p["conv2_w"], p["conv2_b"] = conv_init(ks[4], ks[5], C3, C2, K2)
    p["conv3_w"], p["conv3_b"] = conv_init(ks[6], ks[7], C4, C3, K3)

    def bn_fold(kg, kb, c):
        # BatchNorm2d in eval mode; running stats at defaults.
        gamma = 1.0 + 0.1 * jax.random.normal(kg, (c,))
        beta = 0.1 * jax.random.normal(kb, (c,))
        mean = jnp.zeros((c,), jnp.float32)
        var = jnp.ones((c,), jnp.float32)
        scale = gamma / jnp.sqrt(var + 1e-5)
        shift = beta - mean * scale
        return scale.astype(jnp.float32), shift.astype(jnp.float32)

    p["bn1_s"], p["bn1_sh"] = bn_fold(ks[8], ks[9], C2)
    p["bn2_s"], p["bn2_sh"] = bn_fold(ks[10], ks[11], C3)
    p["bn3_s"], p["bn3_sh"] = bn_fold(ks[12], ks[13], C4)

    def lin_init(kw, kb, cout, cin):
        s = 1.0 / jnp.sqrt(cin)
        return (jax.random.uniform(kw, (cout, cin), jnp.float32, -s, s),
                jax.random.uniform(kb, (cout,), jnp.float32, -s, s))

    p["lin2_w"], p["lin2_b"] = lin_init(ks[14], ks[15], D2, C4)
    p["lin3_w"], p["lin3_b"] = lin_init(ks[16], ks[17], NCLS, D2)
    p["loss_weight"] = jax.random.uniform(ks[18], (1,))
    return p


def prepare_params(p):
    """Fold eval-mode BN into conv weights, transpose to (k, Cin, Cout), cast MXU
    operands to bf16 (f32 accumulation in-kernel; layer-1 stays f32), pack all
    biases / the shrinkage threshold into one (8,128) f32 array, and zero-pad the
    classifier to a 128-lane output."""
    kp = {}
    kp["cw"] = p["cconv_w"].T.astype(jnp.float32)                     # (KC, C1)

    def fold_conv(w, b, scale, shift):
        # y = scale*(x*W + b) + shift  ==  x*(W*scale) + (b*scale + shift)
        wf = (w * scale[:, None, None]).transpose(2, 1, 0)            # (k, Cin, Cout)
        bf = b * scale + shift
        return wf.astype(jnp.bfloat16), bf.astype(jnp.float32)

    kp["w1"], b1 = fold_conv(p["conv1_w"], p["conv1_b"], p["bn1_s"], p["bn1_sh"])
    kp["w2"], b2 = fold_conv(p["conv2_w"], p["conv2_b"], p["bn2_s"], p["bn2_sh"])
    kp["w3"], b3 = fold_conv(p["conv3_w"], p["conv3_b"], p["bn3_s"], p["bn3_sh"])

    kp["wl2"] = p["lin2_w"].T.astype(jnp.bfloat16)                    # (C4, D2)
    wl3 = jnp.zeros((D2, NPAD), jnp.float32).at[:, :NCLS].set(p["lin3_w"].T)
    kp["wl3"] = wl3.astype(jnp.bfloat16)                              # (D2, NPAD)

    bias = jnp.zeros((8, NPAD), jnp.float32)
    bias = bias.at[0, :C1].set(p["proj_thr"])       # shrinkage threshold
    bias = bias.at[1, :C2].set(b1)
    bias = bias.at[2, :C3].set(b2)
    bias = bias.at[3, :C4].set(b3)
    bias = bias.at[4, :D2].set(p["lin2_b"])
    bias = bias.at[5, :NCLS].set(p["lin3_b"])
    kp["bias"] = bias
    return kp


# ----------------------------------------------------------------------------
# Forward pass (mirrors ManifoldNetComplex.forward) — one pallas_call,
# grid over groups of TB samples.
# ----------------------------------------------------------------------------

def _pick_tb(B, tb=None):
    if tb is not None:
        assert B % tb == 0
        return tb
    divs = [d for d in range(1, B + 1) if B % d == 0]
    good = [d for d in divs if d <= 32 and B // d >= 2]   # keep >=2 grid steps (v7x)
    if good:
        return max(good)
    small = [d for d in divs if d <= 32]
    return max(small) if small else B


def manifoldnet_forward(kp, x, labels=None, tb=None):
    B = x.shape[0]
    TB = _pick_tb(B, tb)
    G = B // TB
    NL = TB * R - SHRINK          # rows stored per step (multiple of 8)

    # Windowing: stride == kernel -> the first H1*SC = 125 samples reshape
    # directly into (H1, KC) windows.  Each sample then gets a fixed R=32 row
    # slot (rows H1..R-1 zero) so the kernel works on flat (TB*R, C) arrays.
    xr = x[:, :, 0, :H1 * SC, 0].reshape(B, 2, H1, KC).astype(jnp.float32)
    xp = jnp.zeros((2, B, R, KC), jnp.float32).at[:, :, :H1, :].set(
        jnp.transpose(xr, (1, 0, 2, 3)))
    x_flat = xp.reshape(2, B * R, KC)

    weight_names = ("cw", "w1", "w2", "w3", "wl2", "wl3", "bias")

    def const_spec(a):
        zeros = (0,) * a.ndim
        return pl.BlockSpec(a.shape, lambda i, _z=zeros: _z)   # same block every
                                                               # step -> no re-DMA

    out = pl.pallas_call(
        _fwd_kernel,
        out_shape=jax.ShapeDtypeStruct((G * NL, NPAD), jnp.float32),
        grid=(G,),
        in_specs=[pl.BlockSpec((2, TB * R, KC), lambda i: (0, i, 0))]
                 + [const_spec(kp[n]) for n in weight_names],
        out_specs=pl.BlockSpec((NL, NPAD), lambda i: (i, 0)),
        compiler_params=pltpu.CompilerParams(
            dimension_semantics=("parallel",),        # both TCs on v7x
            vmem_limit_bytes=32 * 1024 * 1024),
    )(x_flat, *(kp[n] for n in weight_names))

    # Valid logits live at local row s*R of each group's block.
    logits = out.reshape(G, NL, NPAD)[:, ::R, :NCLS].reshape(B, NCLS)

    res_loss = jnp.float32(0.0)
    # TODO(synk): SURE training losses (labels path) not reproducible without the
    # shrinkage_layers source; res_loss kept at 0 (loss_weight unused).
    return logits, res_loss


# ----------------------------------------------------------------------------
# Pure-JAX reference (f32) for a correctness sanity check
# ----------------------------------------------------------------------------

def reference_forward(p, x):
    B = x.shape[0]
    xr = x[:, :, 0, :H1 * SC, 0].reshape(B, 2, H1, KC).astype(jnp.float32)
    z = jnp.einsum("bphk,ck->bpch", xr, p["cconv_w"], precision="highest")
    mag = jnp.sqrt(z[:, 0] ** 2 + z[:, 1] ** 2 + 1e-12)                 # (B, C1, H1)
    h = jnp.maximum(mag - p["proj_thr"][None, :, None], 0.0)

    def conv_bn_relu(h, w, b, scale, shift):
        k = w.shape[-1]
        ho = h.shape[-1] - k + 1
        y = sum(jnp.einsum("bci,oc->boi", h[:, :, t:t + ho], w[:, :, t],
                           precision="highest") for t in range(k))
        y = (y + b[None, :, None]) * scale[None, :, None] + shift[None, :, None]
        return jnp.maximum(y, 0.0)

    def mp(h):
        ho = h.shape[-1] // 2
        return jnp.max(h[:, :, :2 * ho].reshape(h.shape[0], h.shape[1], ho, 2),
                       axis=-1)

    h = conv_bn_relu(h, p["conv1_w"], p["conv1_b"], p["bn1_s"], p["bn1_sh"])
    h = mp(h)
    h = conv_bn_relu(h, p["conv2_w"], p["conv2_b"], p["bn2_s"], p["bn2_sh"])
    h = mp(h)
    h = conv_bn_relu(h, p["conv3_w"], p["conv3_b"], p["bn3_s"], p["bn3_sh"])
    h = h.reshape(B, -1)
    h = jnp.maximum(jnp.dot(h, p["lin2_w"].T, precision="highest") + p["lin2_b"],
                    0.0)
    return jnp.dot(h, p["lin3_w"].T, precision="highest") + p["lin3_b"]


# ----------------------------------------------------------------------------

if __name__ == "__main__":
    key = jax.random.PRNGKey(0)
    # RadioML samples: batch=8, complex (re/im)=2, 1 channel, 128 samples, width 1.
    B = 8
    x = jax.random.normal(key, (B, 2, 1, H0, 1), jnp.float32)
    params = init_params(jax.random.PRNGKey(0))
    kparams = prepare_params(params)

    fwd = jax.jit(manifoldnet_forward)
    logits, res_loss = fwd(kparams, x)
    logits = jax.block_until_ready(logits)

    assert logits.shape == (B, NCLS), logits.shape
    assert bool(jnp.all(jnp.isfinite(logits)))

    # Sanity check against the pure-JAX f32 reference (bf16 MXU operands -> loose tol).
    ref = reference_forward(params, x)
    max_err = float(jnp.max(jnp.abs(logits - ref)))
    assert max_err < 5e-2, f"kernel vs reference max abs err {max_err}"

    print("KERNEL_OK")
</pallas_src>

<mosaic_0001>
module attributes {stable_mosaic.version = 11 : i64} {
  func.func @_fwd_kernel(%arg0: i32, %arg1: memref<2x128x5xf32, #tpu.memory_space<vmem>>, %arg2: memref<5x20xf32, #tpu.memory_space<vmem>>, %arg3: memref<5x20x40xbf16, #tpu.memory_space<vmem>>, %arg4: memref<5x40x60xbf16, #tpu.memory_space<vmem>>, %arg5: memref<3x60x80xbf16, #tpu.memory_space<vmem>>, %arg6: memref<80x40xbf16, #tpu.memory_space<vmem>>, %arg7: memref<40x128xbf16, #tpu.memory_space<vmem>>, %arg8: memref<8x128xf32, #tpu.memory_space<vmem>>, %arg9: memref<104x128xf32, #tpu.memory_space<vmem>>) attributes {dimension_semantics = [#tpu.dimension_semantics<parallel>], iteration_bounds = array<i64: 2>, scalar_prefetch = 0 : i64, scratch_operands = 0 : i64, tpu.core_type = #tpu.core_type<tc>, window_params = [{transform_indices = @transform_0, window_bounds = array<i64: 2, 128, 5>}, {pipeline_mode = #tpu.pipeline_mode<synchronous>, transform_indices = @transform_1, window_bounds = array<i64: 5, 20>}, {pipeline_mode = #tpu.pipeline_mode<synchronous>, transform_indices = @transform_2, window_bounds = array<i64: 5, 20, 40>}, {pipeline_mode = #tpu.pipeline_mode<synchronous>, transform_indices = @transform_3, window_bounds = array<i64: 5, 40, 60>}, {pipeline_mode = #tpu.pipeline_mode<synchronous>, transform_indices = @transform_4, window_bounds = array<i64: 3, 60, 80>}, {pipeline_mode = #tpu.pipeline_mode<synchronous>, transform_indices = @transform_5, window_bounds = array<i64: 80, 40>}, {pipeline_mode = #tpu.pipeline_mode<synchronous>, transform_indices = @transform_6, window_bounds = array<i64: 40, 128>}, {pipeline_mode = #tpu.pipeline_mode<synchronous>, transform_indices = @transform_7, window_bounds = array<i64: 8, 128>}, {transform_indices = @transform_8, window_bounds = array<i64: 104, 128>}]} {
    %c0 = arith.constant 0 : index
    %c0_0 = arith.constant 0 : index
    %c0_1 = arith.constant 0 : index
    %0 = vector.load %arg1[%c0, %c0_0, %c0_1] : memref<2x128x5xf32, #tpu.memory_space<vmem>>, vector<2x128x5xf32>
    %1 = vector.shape_cast %0 : vector<2x128x5xf32> to vector<256x5xf32>
    %c0_2 = arith.constant 0 : index
    %c0_3 = arith.constant 0 : index
    %2 = vector.load %arg2[%c0_2, %c0_3] : memref<5x20xf32, #tpu.memory_space<vmem>>, vector<5x20xf32>
    %cst = arith.constant dense<0.000000e+00> : vector<256x20xf32>
    %3 = tpu.matmul %1, %2, %cst {dimension_numbers = #tpu.dot_dimension_numbers<[1], [0], [0], [1], [0, 0, 1, 1], [], []>} : vector<256x5xf32>, vector<5x20xf32>, vector<256x20xf32> -> vector<256x20xf32>
    %4 = vector.extract_strided_slice %3 {offsets = [0, 0], sizes = [128, 20], strides = [1, 1]} : vector<256x20xf32> to vector<128x20xf32>
    %5 = vector.extract_strided_slice %3 {offsets = [128, 0], sizes = [128, 20], strides = [1, 1]} : vector<256x20xf32> to vector<128x20xf32>
    %6 = arith.mulf %4, %4 : vector<128x20xf32>
    %7 = arith.mulf %5, %5 : vector<128x20xf32>
    %8 = arith.addf %6, %7 : vector<128x20xf32>
    %cst_4 = arith.constant 9.99999996E-13 : f32
    %9 = vector.broadcast %cst_4 : f32 to vector<128x20xf32>
    %10 = arith.addf %8, %9 : vector<128x20xf32>
    %11 = math.sqrt %10 : vector<128x20xf32>
    %c0_5 = arith.constant 0 : index
    %c0_6 = arith.constant 0 : index
    %12 = vector.load %arg8[%c0_5, %c0_6] : memref<8x128xf32, #tpu.memory_space<vmem>>, vector<1x20xf32>
    %13 = vector.broadcast %12 : vector<1x20xf32> to vector<128x20xf32>
    %14 = arith.subf %11, %13 : vector<128x20xf32>
    %cst_7 = arith.constant 0.000000e+00 : f32
    %15 = vector.broadcast %cst_7 : f32 to vector<128x20xf32>
    %16 = arith.maximumf %14, %15 : vector<128x20xf32>
    %17 = arith.truncf %16 : vector<128x20xf32> to vector<128x20xbf16>
    %18 = vector.extract_strided_slice %17 {offsets = [0, 0], sizes = [124, 20], strides = [1, 1]} : vector<128x20xbf16> to vector<124x20xbf16>
    %c0_8 = arith.constant 0 : index
    %c0_9 = arith.constant 0 : index
    %c0_10 = arith.constant 0 : index
    %19 = vector.load %arg3[%c0_8, %c0_9, %c0_10] : memref<5x20x40xbf16, #tpu.memory_space<vmem>>, vector<1x20x40xbf16>
    %20 = vector.shape_cast %19 : vector<1x20x40xbf16> to vector<20x40xbf16>
    %cst_11 = arith.constant dense<0.000000e+00> : vector<124x40xf32>
    %21 = tpu.matmul %18, %20, %cst_11 {dimension_numbers = #tpu.dot_dimension_numbers<[1], [0], [0], [1], [0, 0, 1, 1], [], []>} : vector<124x20xbf16>, vector<20x40xbf16>, vector<124x40xf32> -> vector<124x40xf32>
    %22 = vector.extract_strided_slice %17 {offsets = [1, 0], sizes = [124, 20], strides = [1, 1]} : vector<128x20xbf16> to vector<124x20xbf16>
    %c1 = arith.constant 1 : index
    %c0_12 = arith.constant 0 : index
    %c0_13 = arith.constant 0 : index
    %23 = vector.load %arg3[%c1, %c0_12, %c0_13] : memref<5x20x40xbf16, #tpu.memory_space<vmem>>, vector<1x20x40xbf16>
    %24 = vector.shape_cast %23 : vector<1x20x40xbf16> to vector<20x40xbf16>
    %cst_14 = arith.constant dense<0.000000e+00> : vector<124x40xf32>
    %25 = tpu.matmul %22, %24, %cst_14 {dimension_numbers = #tpu.dot_dimension_numbers<[1], [0], [0], [1], [0, 0, 1, 1], [], []>} : vector<124x20xbf16>, vector<20x40xbf16>, vector<124x40xf32> -> vector<124x40xf32>
    %26 = arith.addf %21, %25 : vector<124x40xf32>
    %27 = vector.extract_strided_slice %17 {offsets = [2, 0], sizes = [124, 20], strides = [1, 1]} : vector<128x20xbf16> to vector<124x20xbf16>
    %c2 = arith.constant 2 : index
    %c0_15 = arith.constant 0 : index
    %c0_16 = arith.constant 0 : index
    %28 = vector.load %arg3[%c2, %c0_15, %c0_16] : memref<5x20x40xbf16, #tpu.memory_space<vmem>>, vector<1x20x40xbf16>
    %29 = vector.shape_cast %28 : vector<1x20x40xbf16> to vector<20x40xbf16>
    %cst_17 = arith.constant dense<0.000000e+00> : vector<124x40xf32>
    %30 = tpu.matmul %27, %29, %cst_17 {dimension_numbers = #tpu.dot_dimension_numbers<[1], [0], [0], [1], [0, 0, 1, 1], [], []>} : vector<124x20xbf16>, vector<20x40xbf16>, vector<124x40xf32> -> vector<124x40xf32>
    %31 = arith.addf %26, %30 : vector<124x40xf32>
    %32 = vector.extract_strided_slice %17 {offsets = [3, 0], sizes = [124, 20], strides = [1, 1]} : vector<128x20xbf16> to vector<124x20xbf16>
    %c3 = arith.constant 3 : index
    %c0_18 = arith.constant 0 : index
    %c0_19 = arith.constant 0 : index
    %33 = vector.load %arg3[%c3, %c0_18, %c0_19] : memref<5x20x40xbf16, #tpu.memory_space<vmem>>, vector<1x20x40xbf16>
    %34 = vector.shape_cast %33 : vector<1x20x40xbf16> to vector<20x40xbf16>
    %cst_20 = arith.constant dense<0.000000e+00> : vector<124x40xf32>
    %35 = tpu.matmul %32, %34, %cst_20 {dimension_numbers = #tpu.dot_dimension_numbers<[1], [0], [0], [1], [0, 0, 1, 1], [], []>} : vector<124x20xbf16>, vector<20x40xbf16>, vector<124x40xf32> -> vector<124x40xf32>
    %36 = arith.addf %31, %35 : vector<124x40xf32>
    %37 = vector.extract_strided_slice %17 {offsets = [4, 0], sizes = [124, 20], strides = [1, 1]} : vector<128x20xbf16> to vector<124x20xbf16>
    %c4 = arith.constant 4 : index
    %c0_21 = arith.constant 0 : index
    %c0_22 = arith.constant 0 : index
    %38 = vector.load %arg3[%c4, %c0_21, %c0_22] : memref<5x20x40xbf16, #tpu.memory_space<vmem>>, vector<1x20x40xbf16>
    %39 = vector.shape_cast %38 : vector<1x20x40xbf16> to vector<20x40xbf16>
    %cst_23 = arith.constant dense<0.000000e+00> : vector<124x40xf32>
    %40 = tpu.matmul %37, %39, %cst_23 {dimension_numbers = #tpu.dot_dimension_numbers<[1], [0], [0], [1], [0, 0, 1, 1], [], []>} : vector<124x20xbf16>, vector<20x40xbf16>, vector<124x40xf32> -> vector<124x40xf32>
    %41 = arith.addf %36, %40 : vector<124x40xf32>
    %c1_24 = arith.constant 1 : index
    %c0_25 = arith.constant 0 : index
    %42 = vector.load %arg8[%c1_24, %c0_25] : memref<8x128xf32, #tpu.memory_space<vmem>>, vector<1x40xf32>
    %43 = vector.broadcast %42 : vector<1x40xf32> to vector<124x40xf32>
    %44 = arith.addf %41, %43 : vector<124x40xf32>
    %cst_26 = arith.constant 0.000000e+00 : f32
    %45 = vector.broadcast %cst_26 : f32 to vector<124x40xf32>
    %46 = arith.maximumf %44, %45 : vector<124x40xf32>
    %47 = vector.extract_strided_slice %46 {offsets = [0, 0], sizes = [123, 40], strides = [1, 1]} : vector<124x40xf32> to vector<123x40xf32>
    %48 = vector.extract_strided_slice %46 {offsets = [1, 0], sizes = [123, 40], strides = [1, 1]} : vector<124x40xf32> to vector<123x40xf32>
    %49 = arith.maximumf %47, %48 : vector<123x40xf32>
    %50 = arith.truncf %49 : vector<123x40xf32> to vector<123x40xbf16>
    %51 = vector.extract_strided_slice %50 {offsets = [0, 0], sizes = [115, 40], strides = [1, 1]} : vector<123x40xbf16> to vector<115x40xbf16>
    %c0_27 = arith.constant 0 : index
    %c0_28 = arith.constant 0 : index
    %c0_29 = arith.constant 0 : index
    %52 = vector.load %arg4[%c0_27, %c0_28, %c0_29] : memref<5x40x60xbf16, #tpu.memory_space<vmem>>, vector<1x40x60xbf16>
    %53 = vector.shape_cast %52 : vector<1x40x60xbf16> to vector<40x60xbf16>
    %cst_30 = arith.constant dense<0.000000e+00> : vector<115x60xf32>
    %54 = tpu.matmul %51, %53, %cst_30 {dimension_numbers = #tpu.dot_dimension_numbers<[1], [0], [0], [1], [0, 0, 1, 1], [], []>} : vector<115x40xbf16>, vector<40x60xbf16>, vector<115x60xf32> -> vector<115x60xf32>
    %55 = vector.extract_strided_slice %50 {offsets = [2, 0], sizes = [115, 40], strides = [1, 1]} : vector<123x40xbf16> to vector<115x40xbf16>
    %c1_31 = arith.constant 1 : index
    %c0_32 = arith.constant 0 : index
    %c0_33 = arith.constant 0 : index
    %56 = vector.load %arg4[%c1_31, %c0_32, %c0_33] : memref<5x40x60xbf16, #tpu.memory_space<vmem>>, vector<1x40x60xbf16>
    %57 = vector.shape_cast %56 : vector<1x40x60xbf16> to vector<40x60xbf16>
    %cst_34 = arith.constant dense<0.000000e+00> : vector<115x60xf32>
    %58 = tpu.matmul %55, %57, %cst_34 {dimension_numbers = #tpu.dot_dimension_numbers<[1], [0], [0], [1], [0, 0, 1, 1], [], []>} : vector<115x40xbf16>, vector<40x60xbf16>, vector<115x60xf32> -> vector<115x60xf32>
    %59 = arith.addf %54, %58 : vector<115x60xf32>
    %60 = vector.extract_strided_slice %50 {offsets = [4, 0], sizes = [115, 40], strides = [1, 1]} : vector<123x40xbf16> to vector<115x40xbf16>
    %c2_35 = arith.constant 2 : index
    %c0_36 = arith.constant 0 : index
    %c0_37 = arith.constant 0 : index
    %61 = vector.load %arg4[%c2_35, %c0_36, %c0_37] : memref<5x40x60xbf16, #tpu.memory_space<vmem>>, vector<1x40x60xbf16>
    %62 = vector.shape_cast %61 : vector<1x40x60xbf16> to vector<40x60xbf16>
    %cst_38 = arith.constant dense<0.000000e+00> : vector<115x60xf32>
    %63 = tpu.matmul %60, %62, %cst_38 {dimension_numbers = #tpu.dot_dimension_numbers<[1], [0], [0], [1], [0, 0, 1, 1], [], []>} : vector<115x40xbf16>, vector<40x60xbf16>, vector<115x60xf32> -> vector<115x60xf32>
    %64 = arith.addf %59, %63 : vector<115x60xf32>
    %65 = vector.extract_strided_slice %50 {offsets = [6, 0], sizes = [115, 40], strides = [1, 1]} : vector<123x40xbf16> to vector<115x40xbf16>
    %c3_39 = arith.constant 3 : index
    %c0_40 = arith.constant 0 : index
    %c0_41 = arith.constant 0 : index
    %66 = vector.load %arg4[%c3_39, %c0_40, %c0_41] : memref<5x40x60xbf16, #tpu.memory_space<vmem>>, vector<1x40x60xbf16>
    %67 = vector.shape_cast %66 : vector<1x40x60xbf16> to vector<40x60xbf16>
    %cst_42 = arith.constant dense<0.000000e+00> : vector<115x60xf32>
    %68 = tpu.matmul %65, %67, %cst_42 {dimension_numbers = #tpu.dot_dimension_numbers<[1], [0], [0], [1], [0, 0, 1, 1], [], []>} : vector<115x40xbf16>, vector<40x60xbf16>, vector<115x60xf32> -> vector<115x60xf32>
    %69 = arith.addf %64, %68 : vector<115x60xf32>
    %70 = vector.extract_strided_slice %50 {offsets = [8, 0], sizes = [115, 40], strides = [1, 1]} : vector<123x40xbf16> to vector<115x40xbf16>
    %c4_43 = arith.constant 4 : index
    %c0_44 = arith.constant 0 : index
    %c0_45 = arith.constant 0 : index
    %71 = vector.load %arg4[%c4_43, %c0_44, %c0_45] : memref<5x40x60xbf16, #tpu.memory_space<vmem>>, vector<1x40x60xbf16>
    %72 = vector.shape_cast %71 : vector<1x40x60xbf16> to vector<40x60xbf16>
    %cst_46 = arith.constant dense<0.000000e+00> : vector<115x60xf32>
    %73 = tpu.matmul %70, %72, %cst_46 {dimension_numbers = #tpu.dot_dimension_numbers<[1], [0], [0], [1], [0, 0, 1, 1], [], []>} : vector<115x40xbf16>, vector<40x60xbf16>, vector<115x60xf32> -> vector<115x60xf32>
    %74 = arith.addf %69, %73 : vector<115x60xf32>
    %c2_47 = arith.constant 2 : index
    %c0_48 = arith.constant 0 : index
    %75 = vector.load %arg8[%c2_47, %c0_48] : memref<8x128xf32, #tpu.memory_space<vmem>>, vector<1x60xf32>
    %76 = vector.broadcast %75 : vector<1x60xf32> to vector<115x60xf32>
    %77 = arith.addf %74, %76 : vector<115x60xf32>
    %cst_49 = arith.constant 0.000000e+00 : f32
    %78 = vector.broadcast %cst_49 : f32 to vector<115x60xf32>
    %79 = arith.maximumf %77, %78 : vector<115x60xf32>
    %80 = vector.extract_strided_slice %79 {offsets = [0, 0], sizes = [113, 60], strides = [1, 1]} : vector<115x60xf32> to vector<113x60xf32>
    %81 = vector.extract_strided_slice %79 {offsets = [2, 0], sizes = [113, 60], strides = [1, 1]} : vector<115x60xf32> to vector<113x60xf32>
    %82 = arith.maximumf %80, %81 : vector<113x60xf32>
    %83 = arith.truncf %82 : vector<113x60xf32> to vector<113x60xbf16>
    %84 = vector.extract_strided_slice %83 {offsets = [0, 0], sizes = [105, 60], strides = [1, 1]} : vector<113x60xbf16> to vector<105x60xbf16>
    %c0_50 = arith.constant 0 : index
    %c0_51 = arith.constant 0 : index
    %c0_52 = arith.constant 0 : index
    %85 = vector.load %arg5[%c0_50, %c0_51, %c0_52] : memref<3x60x80xbf16, #tpu.memory_space<vmem>>, vector<1x60x80xbf16>
    %86 = vector.shape_cast %85 : vector<1x60x80xbf16> to vector<60x80xbf16>
    %cst_53 = arith.constant dense<0.000000e+00> : vector<105x80xf32>
    %87 = tpu.matmul %84, %86, %cst_53 {dimension_numbers = #tpu.dot_dimension_numbers<[1], [0], [0], [1], [0, 0, 1, 1], [], []>} : vector<105x60xbf16>, vector<60x80xbf16>, vector<105x80xf32> -> vector<105x80xf32>
    %88 = vector.extract_strided_slice %83 {offsets = [4, 0], sizes = [105, 60], strides = [1, 1]} : vector<113x60xbf16> to vector<105x60xbf16>
    %c1_54 = arith.constant 1 : index
    %c0_55 = arith.constant 0 : index
    %c0_56 = arith.constant 0 : index
    %89 = vector.load %arg5[%c1_54, %c0_55, %c0_56] : memref<3x60x80xbf16, #tpu.memory_space<vmem>>, vector<1x60x80xbf16>
    %90 = vector.shape_cast %89 : vector<1x60x80xbf16> to vector<60x80xbf16>
    %cst_57 = arith.constant dense<0.000000e+00> : vector<105x80xf32>
    %91 = tpu.matmul %88, %90, %cst_57 {dimension_numbers = #tpu.dot_dimension_numbers<[1], [0], [0], [1], [0, 0, 1, 1], [], []>} : vector<105x60xbf16>, vector<60x80xbf16>, vector<105x80xf32> -> vector<105x80xf32>
    %92 = arith.addf %87, %91 : vector<105x80xf32>
    %93 = vector.extract_strided_slice %83 {offsets = [8, 0], sizes = [105, 60], strides = [1, 1]} : vector<113x60xbf16> to vector<105x60xbf16>
    %c2_58 = arith.constant 2 : index
    %c0_59 = arith.constant 0 : index
    %c0_60 = arith.constant 0 : index
    %94 = vector.load %arg5[%c2_58, %c0_59, %c0_60] : memref<3x60x80xbf16, #tpu.memory_space<vmem>>, vector<1x60x80xbf16>
    %95 = vector.shape_cast %94 : vector<1x60x80xbf16> to vector<60x80xbf16>
    %cst_61 = arith.constant dense<0.000000e+00> : vector<105x80xf32>
    %96 = tpu.matmul %93, %95, %cst_61 {dimension_numbers = #tpu.dot_dimension_numbers<[1], [0], [0], [1], [0, 0, 1, 1], [], []>} : vector<105x60xbf16>, vector<60x80xbf16>, vector<105x80xf32> -> vector<105x80xf32>
    %97 = arith.addf %92, %96 : vector<105x80xf32>
    %c3_62 = arith.constant 3 : index
    %c0_63 = arith.constant 0 : index
    %98 = vector.load %arg8[%c3_62, %c0_63] : memref<8x128xf32, #tpu.memory_space<vmem>>, vector<1x80xf32>
    %99 = vector.broadcast %98 : vector<1x80xf32> to vector<105x80xf32>
    %100 = arith.addf %97, %99 : vector<105x80xf32>
    %cst_64 = arith.constant 0.000000e+00 : f32
    %101 = vector.broadcast %cst_64 : f32 to vector<105x80xf32>
    %102 = arith.maximumf %100, %101 : vector<105x80xf32>
    %103 = arith.truncf %102 : vector<105x80xf32> to vector<105x80xbf16>
    %c0_65 = arith.constant 0 : index
    %c0_66 = arith.constant 0 : index
    %104 = vector.load %arg6[%c0_65, %c0_66] : memref<80x40xbf16, #tpu.memory_space<vmem>>, vector<80x40xbf16>
    %cst_67 = arith.constant dense<0.000000e+00> : vector<105x40xf32>
    %105 = tpu.matmul %103, %104, %cst_67 {dimension_numbers = #tpu.dot_dimension_numbers<[1], [0], [0], [1], [0, 0, 1, 1], [], []>} : vector<105x80xbf16>, vector<80x40xbf16>, vector<105x40xf32> -> vector<105x40xf32>
    %c4_68 = arith.constant 4 : index
    %c0_69 = arith.constant 0 : index
    %106 = vector.load %arg8[%c4_68, %c0_69] : memref<8x128xf32, #tpu.memory_space<vmem>>, vector<1x40xf32>
    %107 = vector.broadcast %106 : vector<1x40xf32> to vector<105x40xf32>
    %108 = arith.addf %105, %107 : vector<105x40xf32>
    %cst_70 = arith.constant 0.000000e+00 : f32
    %109 = vector.broadcast %cst_70 : f32 to vector<105x40xf32>
    %110 = arith.maximumf %108, %109 : vector<105x40xf32>
    %111 = arith.truncf %110 : vector<105x40xf32> to vector<105x40xbf16>
    %c0_71 = arith.constant 0 : index
    %c0_72 = arith.constant 0 : index
    %112 = vector.load %arg7[%c0_71, %c0_72] : memref<40x128xbf16, #tpu.memory_space<vmem>>, vector<40x128xbf16>
    %cst_73 = arith.constant dense<0.000000e+00> : vector<105x128xf32>
    %113 = tpu.matmul %111, %112, %cst_73 {dimension_numbers = #tpu.dot_dimension_numbers<[1], [0], [0], [1], [0, 0, 1, 1], [], []>} : vector<105x40xbf16>, vector<40x128xbf16>, vector<105x128xf32> -> vector<105x128xf32>
    %c5 = arith.constant 5 : index
    %c0_74 = arith.constant 0 : index
    %114 = vector.load %arg8[%c5, %c0_74] : memref<8x128xf32, #tpu.memory_space<vmem>>, vector<1x128xf32>
    %115 = vector.broadcast %114 : vector<1x128xf32> to vector<105x128xf32>
    %116 = arith.addf %113, %115 : vector<105x128xf32>
    %117 = vector.extract_strided_slice %116 {offsets = [0, 0], sizes = [104, 128], strides = [1, 1]} : vector<105x128xf32> to vector<104x128xf32>
    %c0_75 = arith.constant 0 : index
    %c0_76 = arith.constant 0 : index
    %118 = vector.load %arg9[%c0_75, %c0_76] : memref<104x128xf32, #tpu.memory_space<vmem>>, vector<104x128xf32>
    tpu.vector_store %arg9[%c0_75, %c0_76], %117 {strides = array<i32>} : memref<104x128xf32, #tpu.memory_space<vmem>>, vector<104x128xf32>,
    return
  }
  func.func @transform_0(%arg0: i32) -> (i32, i32, i32) {
    %c0_i32 = arith.constant 0 : i32
    %c0_i32_0 = arith.constant 0 : i32
    %c0_i32_1 = arith.constant 0 : i32
    return %c0_i32, %arg0, %c0_i32_0 : i32, i32, i32
  }
  func.func @transform_1(%arg0: i32) -> (i32, i32) {
    %c0_i32 = arith.constant 0 : i32
    %c0_i32_0 = arith.constant 0 : i32
    %c0_i32_1 = arith.constant 0 : i32
    return %c0_i32, %c0_i32_0 : i32, i32
  }
  func.func @transform_2(%arg0: i32) -> (i32, i32, i32) {
    %c0_i32 = arith.constant 0 : i32
    %c0_i32_0 = arith.constant 0 : i32
    %c0_i32_1 = arith.constant 0 : i32
    %c0_i32_2 = arith.constant 0 : i32
    return %c0_i32, %c0_i32_0, %c0_i32_1 : i32, i32, i32
  }
  func.func @transform_3(%arg0: i32) -> (i32, i32, i32) {
    %c0_i32 = arith.constant 0 : i32
    %c0_i32_0 = arith.constant 0 : i32
    %c0_i32_1 = arith.constant 0 : i32
    %c0_i32_2 = arith.constant 0 : i32
    return %c0_i32, %c0_i32_0, %c0_i32_1 : i32, i32, i32
  }
  func.func @transform_4(%arg0: i32) -> (i32, i32, i32) {
    %c0_i32 = arith.constant 0 : i32
    %c0_i32_0 = arith.constant 0 : i32
    %c0_i32_1 = arith.constant 0 : i32
    %c0_i32_2 = arith.constant 0 : i32
    return %c0_i32, %c0_i32_0, %c0_i32_1 : i32, i32, i32
  }
  func.func @transform_5(%arg0: i32) -> (i32, i32) {
    %c0_i32 = arith.constant 0 : i32
    %c0_i32_0 = arith.constant 0 : i32
    %c0_i32_1 = arith.constant 0 : i32
    return %c0_i32, %c0_i32_0 : i32, i32
  }
  func.func @transform_6(%arg0: i32) -> (i32, i32) {
    %c0_i32 = arith.constant 0 : i32
    %c0_i32_0 = arith.constant 0 : i32
    %c0_i32_1 = arith.constant 0 : i32
    return %c0_i32, %c0_i32_0 : i32, i32
  }
  func.func @transform_7(%arg0: i32) -> (i32, i32) {
    %c0_i32 = arith.constant 0 : i32
    %c0_i32_0 = arith.constant 0 : i32
    %c0_i32_1 = arith.constant 0 : i32
    return %c0_i32, %c0_i32_0 : i32, i32
  }
  func.func @transform_8(%arg0: i32) -> (i32, i32) {
    %c0_i32 = arith.constant 0 : i32
    %c0_i32_0 = arith.constant 0 : i32
    return %arg0, %c0_i32 : i32, i32
  }
}

</mosaic_0001>

<bundles_post_ra>
// kernel: manifoldnet_forward.1
= control target key start
LH: loop header
LB: loop body
LE: loop exit
PB: predicated region body
PF: predicated region fallthrough
CT: control target
= control target key end

     0   :  { %s5092_s27 = smov 0   ;;  %s5094_s28 = smov 0   ;;  %s6467_s0 = inlined_call_operand.vmem [shape: f32[2,256,5], index: 0, kind: input, shape index: {}]   ;;  %s6468_s1 = inlined_call_operand.vmem [shape: f32[5,20], index: 1, kind: input, shape index: {}]   ;;  %s6469_s2 = inlined_call_operand.vmem [shape: bf16[5,20,40], index: 2, kind: input, shape index: {}]   ;;  %s6470_s3 = inlined_call_operand.vmem [shape: bf16[5,40,60], index: 3, kind: input, shape index: {}]   ;;  %s6471_s4 = inlined_call_operand.vmem [shape: bf16[3,60,80], index: 4, kind: input, shape index: {}]   ;;  %s6472_s5 = inlined_call_operand.vmem [shape: bf16[80,40], index: 5, kind: input, shape index: {}]   ;;  %s6473_s6 = inlined_call_operand.vmem [shape: bf16[40,128], index: 6, kind: input, shape index: {}]   ;;  %s6474_s7 = inlined_call_operand.vmem [shape: f32[8,128], index: 7, kind: input, shape index: {}]   ;;  %s6475_s8 = inlined_call_operand.vmem [shape: f32[208,128], index: 8, kind: output, shape index: {}]  }
   0x1   :  { %s5096_s29 = smov 0  }
   0x2 LB: > { %s3903_s30 = sadd.s32 4294967295, %s5043_s29   ;;  %s5109_s9 = sadd.s32 1, %s5043_s29   ;;  %s5043_s29 = sphi %s5096_s29, %s6478_s29   ;;  %s5039_s28 = sphi %s5094_s28, %s6477_s28   ;;  %s5035_s27 = sphi %s5092_s27, %s6476_s27  }
   0x3   : > { %s22_s10 = ssub.s32 %s5043_s29, %s5109_s9  ;;  %s25_s11 = sadd.s32 1, %s5039_s28 }
   0x4   : > { %p23_p0 = scmp.eq.s32.totalorder %s22_s10, 0  ;;  %p32_p1 = scmp.ne.s32.totalorder %s5039_s28, %s5035_s27 }
   0x5   : > { %p33_p2 = scmp.eq.s32.totalorder %s5043_s29, 0  ;;  %p3906_p4 = scmp.ge.s32.totalorder %s5043_s29, 2 }
   0x6   : > { %s5118_s12 = scalar_select %p23_p0, %s5039_s28, %s25_s11  }
   0x7   : > { %p34_p3 = por %p33_p2, %p32_p1  ;;  %252 = sbr.rel (%p3906_p4) target bundleno = 34 (0x22), region = 44 }
   0xe   : > { %255 = sbr.rel (!%p34_p3) target bundleno = 34 (0x22), region = 48  ;;  %s257_s13 = sand.u32 (%p34_p3), 1, %s5039_s28  }
   0xf   : > { %s4162_s14 = sshll.u32 (%p34_p3), %s5043_s29, 7  ;;  %s3907_s15 = sshll.u32 (%p34_p3), %s257_s13, 8 }
  0x10   : > { %s5126_s18 = scalar_lea.vmem (%p34_p3), %s6467_s0, %s4162_s14  ;;  %s5131_s19 = scalar_lea.vmem (%p34_p3), [#allocation2], %s3907_s15 }
  0x11   : > { %v352_v0 = vld [vmem:[%s5126_s18] sm:$0xff] (%p34_p3)  ;;  %v354_v1 = vld [vmem:[%s5126_s18 + $0x8] sm:$0xff] (%p34_p3)  ;;  %v356_v2 = vld [vmem:[%s5126_s18 + $0x10] sm:$0xff] (%p34_p3) }
  0x12   : > { %353 = vst [vmem:[%s5131_s19] sm:$0xff] (%p34_p3), %v352_v0  ;;  %355 = vst [vmem:[%s5131_s19 + $0x8] sm:$0xff] (%p34_p3), %v354_v1  ;;  %v358_v3 = vld [vmem:[%s5126_s18 + $0x18] sm:$0xff] (%p34_p3)  ;;  %v360_v4 = vld [vmem:[%s5126_s18 + $0x20] sm:$0xff] (%p34_p3) }
  0x13   : > { %357 = vst [vmem:[%s5131_s19 + $0x10] sm:$0xff] (%p34_p3), %v356_v2  ;;  %v362_v5 = vld [vmem:[%s5126_s18 + $0x28] sm:$0xff] (%p34_p3)  ;;  %359 = vst [vmem:[%s5131_s19 + $0x18] sm:$0xff] (%p34_p3), %v358_v3  ;;  %v364_v6 = vld [vmem:[%s5126_s18 + $0x30] sm:$0xff] (%p34_p3) }
  0x14   : > { %361 = vst [vmem:[%s5131_s19 + $0x20] sm:$0xff] (%p34_p3), %v360_v4  ;;  %363 = vst [vmem:[%s5131_s19 + $0x28] sm:$0xff] (%p34_p3), %v362_v5  ;;  %v366_v7 = vld [vmem:[%s5126_s18 + $0x38] sm:$0xff] (%p34_p3)  ;;  %v368_v8 = vld [vmem:[%s5126_s18 + $0x40] sm:$0xff] (%p34_p3) }
  0x15   : > { %365 = vst [vmem:[%s5131_s19 + $0x30] sm:$0xff] %v364_v6  ;;  %367 = vst [vmem:[%s5131_s19 + $0x38] sm:$0xff] %v366_v7  ;;  %v370_v9 = vld [vmem:[%s5126_s18 + $0x48] sm:$0xff]  ;;  %v372_v10 = vld [vmem:[%s5126_s18 + $0x50] sm:$0xff] }
  0x16   : > { %369 = vst [vmem:[%s5131_s19 + $0x40] sm:$0xff] %v368_v8  ;;  %v374_v11 = vld [vmem:[%s5126_s18 + $0x58] sm:$0xff]  ;;  %371 = vst [vmem:[%s5131_s19 + $0x48] sm:$0xff] %v370_v9  ;;  %v376_v12 = vld [vmem:[%s5126_s18 + $0x60] sm:$0xff] }
  0x17   : > { %373 = vst [vmem:[%s5131_s19 + $0x50] sm:$0xff] %v372_v10  ;;  %375 = vst [vmem:[%s5131_s19 + $0x58] sm:$0xff] %v374_v11  ;;  %v378_v13 = vld [vmem:[%s5126_s18 + $0x68] sm:$0xff]  ;;  %v380_v14 = vld [vmem:[%s5126_s18 + $0x70] sm:$0xff] }
  0x18   : > { %377 = vst [vmem:[%s5131_s19 + $0x60] sm:$0xff] %v376_v12  ;;  %379 = vst [vmem:[%s5131_s19 + $0x68] sm:$0xff] %v378_v13  ;;  %v382_v15 = vld [vmem:[%s5126_s18 + $0x78] sm:$0xff]  ;;  %v384_v16 = vld [vmem:[%s5126_s18 + $0x100] sm:$0xff] }
  0x19   : > { %381 = vst [vmem:[%s5131_s19 + $0x70] sm:$0xff] %v380_v14  ;;  %v386_v17 = vld [vmem:[%s5126_s18 + $0x108] sm:$0xff]  ;;  %383 = vst [vmem:[%s5131_s19 + $0x78] sm:$0xff] %v382_v15  ;;  %v388_v18 = vld [vmem:[%s5126_s18 + $0x110] sm:$0xff] }
  0x1a   : > { %385 = vst [vmem:[%s5131_s19 + $0x80] sm:$0xff] %v384_v16  ;;  %387 = vst [vmem:[%s5131_s19 + $0x88] sm:$0xff] %v386_v17  ;;  %v390_v19 = vld [vmem:[%s5126_s18 + $0x118] sm:$0xff]  ;;  %v392_v20 = vld [vmem:[%s5126_s18 + $0x120] sm:$0xff] }
  0x1b   : > { %389 = vst [vmem:[%s5131_s19 + $0x90] sm:$0xff] %v388_v18  ;;  %391 = vst [vmem:[%s5131_s19 + $0x98] sm:$0xff] %v390_v19  ;;  %v394_v21 = vld [vmem:[%s5126_s18 + $0x128] sm:$0xff]  ;;  %v396_v22 = vld [vmem:[%s5126_s18 + $0x130] sm:$0xff] }
  0x1c   : > { %393 = vst [vmem:[%s5131_s19 + $0xa0] sm:$0xff] %v392_v20  ;;  %v398_v23 = vld [vmem:[%s5126_s18 + $0x138] sm:$0xff]  ;;  %395 = vst [vmem:[%s5131_s19 + $0xa8] sm:$0xff] %v394_v21  ;;  %v400_v24 = vld [vmem:[%s5126_s18 + $0x140] sm:$0xff] }
  0x1d   : > { %397 = vst [vmem:[%s5131_s19 + $0xb0] sm:$0xff] %v396_v22  ;;  %399 = vst [vmem:[%s5131_s19 + $0xb8] sm:$0xff] %v398_v23  ;;  %v402_v25 = vld [vmem:[%s5126_s18 + $0x148] sm:$0xff]  ;;  %v404_v26 = vld [vmem:[%s5126_s18 + $0x150] sm:$0xff] }
  0x1e   : > { %401 = vst [vmem:[%s5131_s19 + $0xc0] sm:$0xff] %v400_v24  ;;  %403 = vst [vmem:[%s5131_s19 + $0xc8] sm:$0xff] %v402_v25  ;;  %v406_v27 = vld [vmem:[%s5126_s18 + $0x158] sm:$0xff]  ;;  %v408_v28 = vld [vmem:[%s5126_s18 + $0x160] sm:$0xff] }
  0x1f   : > { %405 = vst [vmem:[%s5131_s19 + $0xd0] sm:$0xff] %v404_v26  ;;  %v410_v29 = vld [vmem:[%s5126_s18 + $0x168] sm:$0xff]  ;;  %407 = vst [vmem:[%s5131_s19 + $0xd8] sm:$0xff] %v406_v27  ;;  %v412_v30 = vld [vmem:[%s5126_s18 + $0x170] sm:$0xff] }
  0x20   : > { %409 = vst [vmem:[%s5131_s19 + $0xe0] sm:$0xff] %v408_v28  ;;  %411 = vst [vmem:[%s5131_s19 + $0xe8] sm:$0xff] %v410_v29  ;;  %v414_v31 = vld [vmem:[%s5126_s18 + $0x178] sm:$0xff] }
  0x21   : > { %413 = vst [vmem:[%s5131_s19 + $0xf0] sm:$0xff] %v412_v30  ;;  %415 = vst [vmem:[%s5131_s19 + $0xf8] sm:$0xff] %v414_v31 }
  0x22 PF: > { %p3910_p5 = scmp.ge.s32.totalorder %s5043_s29, 1  ;;  %p420_p6 = scmp.lt.s32.totalorder %s5043_s29, 3 }
  0x24   : > { %p421_p7 = pnand %p3910_p5, %p420_p6 }
  0x25   : > { %v500_v32 = vld [vmem:[%s6468_s1] sm:$0x1f] (!%p421_p7)  ;;  %vm598_vm0 = vcmask (!%p421_p7), 1044480   ;;  %s427_s22 = sand.u32 (!%p421_p7), 1, %s5035_s27   ;;  %vm501_vm1 = vcmask (!%p421_p7), 39936   ;;  %v4944_v1 = vld [vmem:[%s6469_s2 + $0xc] sm:$0xff] (!%p421_p7)  }
  0x26   : > { %424 = sbr.rel (%p421_p7) target bundleno = 1836 (0x72c), region = 86  ;;  %4356 = vmatprep.subr.msk.mxu0 (!%p421_p7), %vm598_vm0, %v500_v32  ;;  %s3911_s23 = sshll.u32 (!%p421_p7), %s427_s22, 8  ;;  %4406 = vmatprep.subr.bf16.mxu1 (!%p421_p7), %v4944_v1  ;;  %v4945_v2 = vld [vmem:[%s6469_s2 + $0x14] ss:$0 sps:$4 sm:$0x33] (!%p421_p7)   ;;  %vm1153_vm2 = vcmask (!%p421_p7), 1041408  }
  0x27   : > { %4357 = vmatpush3.msk.msra.mxu0 (!%p421_p7), %vm598_vm0, %v500_v32  ;;  %s5202_s24 = scalar_lea.vmem (!%p421_p7), [#allocation2], %s3911_s23  ;;  %4407 = vmatpush3.bf16.msra.mxu1 (!%p421_p7), %v4944_v1  ;;  %v1155_v3 = vsel (!%p421_p7), %vm1153_vm2, %v4945_v2, 0  ;;  %v5279_v4 = vld [vmem:[%s6469_s2] sm:$0xff] (!%p421_p7)   ;;  %s461_s23 = smul.u32 (!%p421_p7), 13, %s3903_s30 }
  0x28   : > { %v468_v33 = vld [vmem:[%s5202_s24] sm:$0xff] (!%p421_p7)  ;;  %v469_v34 = vld [vmem:[%s5202_s24 + $0x8] sm:$0xff] (!%p421_p7)  ;;  %v470_v35 = vld [vmem:[%s5202_s24 + $0x10] sm:$0xff] (!%p421_p7)  ;;  %4908 = vmatprep.subr.msk.bf16.mxu1 (!%p421_p7), %vm1153_vm2, %v4945_v2 }
  0x29   : > { %4358 = vmatprep.mubr.msk.f32.mxu0 (!%p421_p7), %vm501_vm1, %v468_v33  ;;  %v471_v36 = vld [vmem:[%s5202_s24 + $0x18] sm:$0xff] (!%p421_p7)  ;;  %v472_v37 = vld [vmem:[%s5202_s24 + $0x20] sm:$0xff] (!%p421_p7)  ;;  %v473_v38 = vld [vmem:[%s5202_s24 + $0x28] sm:$0xff] (!%p421_p7)  ;;  %p462_p8 = scmp.lt.s32.totalorder (!%p421_p7), %s461_s23, 25 }
  0x2a   : > { %4359 = vmatmul.mubr.msk.f32.vlgmr.msra.gmra.mrb[0].mxu0 (!%p421_p7), %vm501_vm1, %v469_v34  ;;  %v474_v39 = vld [vmem:[%s5202_s24 + $0x30] sm:$0xff] (!%p421_p7)  ;;  %v475_v40 = vld [vmem:[%s5202_s24 + $0x38] sm:$0xff] (!%p421_p7)  ;;  %v476_v41 = vld [vmem:[%s5202_s24 + $0x40] sm:$0xff] (!%p421_p7) }
  0x2b   : > { %4361 = vmatprep.mubr.msk.f32.mxu0 (!%p421_p7), %vm501_vm1, %v470_v35  ;;  %v477_v42 = vld [vmem:[%s5202_s24 + $0x48] sm:$0xff] (!%p421_p7)  ;;  %v478_v43 = vld [vmem:[%s5202_s24 + $0x50] sm:$0xff] (!%p421_p7)  ;;  %v479_v44 = vld [vmem:[%s5202_s24 + $0x58] sm:$0xff] (!%p421_p7)  ;;  %4409 = vmatpush3.bf16.msra.mxu1 (!%p421_p7), %v1155_v3 }
  0x2c   : > { %v480_v45 = vld [vmem:[%s5202_s24 + $0x60] sm:$0xff] (!%p421_p7)  ;;  %v481_v46 = vld [vmem:[%s5202_s24 + $0x68] sm:$0xff] (!%p421_p7)  ;;  %v482_v47 = vld [vmem:[%s5202_s24 + $0x70] sm:$0xff] (!%p421_p7)  ;;  %4426 = vmatprep.subr.bf16.mxu1 (!%p421_p7), %v5279_v4 }
  0x2d   : > { %v483_v48 = vld [vmem:[%s5202_s24 + $0x78] sm:$0xff]  ;;  %v484_v49 = vld [vmem:[%s5202_s24 + $0x80] sm:$0xff]  ;;  %v485_v50 = vld [vmem:[%s5202_s24 + $0x88] sm:$0xff]  ;;  %s6480_s23 = smov (!%p462_p8, %s461_s23), 25 }
  0x2e   : > { %4362 = vmatmul.mubr.msk.f32.gmra.mrb[2].mxu0 %vm501_vm1, %v471_v36  ;;  %v486_v51 = vld [vmem:[%s5202_s24 + $0x90] sm:$0xff]  ;;  %v487_v52 = vld [vmem:[%s5202_s24 + $0x98] sm:$0xff]  ;;  %v488_v53 = vld [vmem:[%s5202_s24 + $0xa0] sm:$0xff] }
  0x2f   : > { %4364 = vmatprep.mubr.msk.f32.mxu0 %vm501_vm1, %v472_v37  ;;  %v489_v54 = vld [vmem:[%s5202_s24 + $0xa8] sm:$0xff]  ;;  %v490_v55 = vld [vmem:[%s5202_s24 + $0xb0] sm:$0xff]  ;;  %v491_v56 = vld [vmem:[%s5202_s24 + $0xb8] sm:$0xff] }
  0x30   : > { %v492_v57 = vld [vmem:[%s5202_s24 + $0xc0] sm:$0xff]  ;;  %v493_v58 = vld [vmem:[%s5202_s24 + $0xc8] sm:$0xff]  ;;  %v494_v59 = vld [vmem:[%s5202_s24 + $0xd0] sm:$0xff] }
  0x31   : > { %v495_v60 = vld [vmem:[%s5202_s24 + $0xd8] sm:$0xff]  ;;  %v496_v61 = vld [vmem:[%s5202_s24 + $0xe0] sm:$0xff]  ;;  %v497_v62 = vld [vmem:[%s5202_s24 + $0xe8] sm:$0xff] }
  0x32   : > { %4365 = vmatmul.mubr.msk.f32.gmra.mrb[4].mxu0 %vm501_vm1, %v473_v38  ;;  %v498_v63 = vld [vmem:[%s5202_s24 + $0xf0] sm:$0xff]  ;;  %v499_v0 = vld [vmem:[%s5202_s24 + $0xf8] sm:$0xff]  ;;  %s3912_s24 = sshll.u32 %s6480_s23, 3 }
  0x33   : > { %4367 = vmatprep.mubr.msk.f32.mxu0 %vm501_vm1, %v474_v39  ;;  %s6442_s11 = scalar_lea.vmem %s6475_s8, %s3912_s24 }
  0x36   : > { %4368 = vmatmul.mubr.msk.f32.gmra.mrb[6].mxu0 %vm501_vm1, %v475_v40 }
  0x37   : > { %4370 = vmatprep.mubr.msk.f32.mxu0 %vm501_vm1, %v476_v41 }
  0x3a   : > { %4371 = vmatmul.mubr.msk.f32.gmra.mrb[8].mxu0 %vm501_vm1, %v477_v42 }
  0x3b   : > { %4373 = vmatprep.mubr.msk.f32.mxu0 %vm501_vm1, %v478_v43 }
  0x3e   : > { %4374 = vmatmul.mubr.msk.f32.gmra.mrb[10].mxu0 %vm501_vm1, %v479_v44 }
  0x3f   : > { %4376 = vmatprep.mubr.msk.f32.mxu0 %vm501_vm1, %v480_v45  ;;  %v5295_v45 = vld [vmem:[%s6469_s2 + $0x8] ss:$0 sps:$4 sm:$0x33]  }
  0x42   : > { %4377 = vmatmul.mubr.msk.f32.gmra.mrb[12].mxu0 %vm501_vm1, %v481_v46 }
  0x43   : > { %4379 = vmatprep.mubr.msk.f32.mxu0 %vm501_vm1, %v482_v47 }
  0x46   : > { %4380 = vmatmul.mubr.msk.f32.gmra.mrb[14].mxu0 %vm501_vm1, %v483_v48 }
  0x47   : > { %4382 = vmatprep.mubr.msk.f32.mxu0 %vm501_vm1, %v484_v49 }
  0x4a   : > { %4383 = vmatmul.mubr.msk.f32.gmra.mrb[16].mxu0 %vm501_vm1, %v485_v50 }
  0x4b   : > { %4385 = vmatprep.mubr.msk.f32.mxu0 %vm501_vm1, %v486_v51 }
  0x4e   : > { %4386 = vmatmul.mubr.msk.f32.gmra.mrb[18].mxu0 %vm501_vm1, %v487_v52 }
  0x4f   : > { %4388 = vmatprep.mubr.msk.f32.mxu0 %vm501_vm1, %v488_v53  ;;  %v5305_v53 = vsel %vm1153_vm2, %v5295_v45, 0 }
  0x52   : > { %4389 = vmatmul.mubr.msk.f32.gmra.mrb[20].mxu0 %vm501_vm1, %v489_v54 }
  0x53   : > { %4391 = vmatprep.mubr.msk.f32.mxu0 %vm501_vm1, %v490_v55 }
  0x56   : > { %4392 = vmatmul.mubr.msk.f32.gmra.mrb[22].mxu0 %vm501_vm1, %v491_v56 }
  0x57   : > { %4394 = vmatprep.mubr.msk.f32.mxu0 %vm501_vm1, %v492_v57 }
  0x5a   : > { %4395 = vmatmul.mubr.msk.f32.gmra.mrb[24].mxu0 %vm501_vm1, %v493_v58 }
  0x5b   : > { %4397 = vmatprep.mubr.msk.f32.mxu0 %vm501_vm1, %v494_v59 }
  0x5e   : > { %4398 = vmatmul.mubr.msk.f32.gmra.mrb[26].mxu0 %vm501_vm1, %v495_v60 }
  0x5f   : > { %4400 = vmatprep.mubr.msk.f32.mxu0 %vm501_vm1, %v496_v61 }
  0x62   : > { %4401 = vmatmul.mubr.msk.f32.gmra.mrb[28].mxu0 %vm501_vm1, %v497_v62 }
  0x63   : > { %4403 = vmatprep.mubr.msk.f32.mxu0 %vm501_vm1, %v498_v63 }
  0x66   : > { %4404 = vmatmul.mubr.msk.f32.gmra.mrb[30].mxu0 %vm501_vm1, %v499_v0 }
  0xfd   : > { %v4360_v5 = vpop.f32.mrb[0].mxu0 }
  0xfe   : > { %v668_v6 = vpop.f32.mrb[1].mxu0  ;;  %v828_v22 = vmul.f32 %v4360_v5, %v4360_v5 }
  0xff   : > { %v827_v25 = vmul.f32 %v668_v6, %v668_v6 }
 0x101   : > { %v4363_v7 = vpop.f32.mrb[2].mxu0 }
 0x102   : > { %v678_v8 = vpop.f32.mrb[3].mxu0  ;;  %v830_v35 = vmul.f32 %v4363_v7, %v4363_v7 }
 0x103   : > { %v829_v36 = vmul.f32 %v678_v8, %v678_v8 }
 0x105   : > { %v4366_v9 = vpop.f32.mrb[4].mxu0 }
 0x106   : > { %v688_v10 = vpop.f32.mrb[5].mxu0  ;;  %v832_v38 = vmul.f32 %v4366_v9, %v4366_v9 }
 0x107   : > { %v831_v43 = vmul.f32 %v688_v10, %v688_v10 }
 0x109   : > { %v4369_v11 = vpop.f32.mrb[6].mxu0 }
 0x10a   : > { %v698_v12 = vpop.f32.mrb[7].mxu0  ;;  %v834_v52 = vmul.f32 %v4369_v11, %v4369_v11 }
 0x10b   : > { %v833_v58 = vmul.f32 %v698_v12, %v698_v12 }
 0x10d   : > { %v4372_v13 = vpop.f32.mrb[8].mxu0 }
 0x10e   : > { %v708_v14 = vpop.f32.mrb[9].mxu0  ;;  %v836_v59 = vmul.f32 %v4372_v13, %v4372_v13 }
 0x10f   : > { %v835_v60 = vmul.f32 %v708_v14, %v708_v14 }
 0x111   : > { %v4375_v15 = vpop.f32.mrb[10].mxu0 }
 0x112   : > { %v718_v16 = vpop.f32.mrb[11].mxu0  ;;  %v838_v61 = vmul.f32 %v4375_v15, %v4375_v15 }
 0x113   : > { %v837_v63 = vmul.f32 %v718_v16, %v718_v16 }
 0x115   : > { %v4378_v17 = vpop.f32.mrb[12].mxu0 }
 0x116   : > { %v728_v18 = vpop.f32.mrb[13].mxu0  ;;  %v5311_v0 = vmul.f32 %v4378_v17, %v4378_v17 }
 0x117   : > { %v5313_v1 = vmul.f32 %v728_v18, %v728_v18 }
 0x119   : > { %v5282_v19 = vpop.f32.mrb[14].mxu0 }
 0x11a   : > { %v5284_v20 = vpop.f32.mrb[15].mxu0  ;;  %v5326_v15 = vmul.f32 %v5282_v19, %v5282_v19 }
 0x11d   : > { %v4384_v21 = vpop.f32.mrb[16].mxu0 }
 0x11e   : > { %v844_v23 = vmul.f32 %v4384_v21, %v4384_v21  ;;  %v748_v24 = vpop.f32.mrb[17].mxu0 }
 0x11f   : > { %v843_v26 = vmul.f32 %v748_v24, %v748_v24 }
 0x120   : > { %v860_v27 = vadd.f32 %v844_v23, %v828_v22 }
 0x121   : > { %v859_v28 = vadd.f32 %v843_v26, %v827_v25  ;;  %v4387_v29 = vpop.f32.mrb[18].mxu0 }
 0x122   : > { %v846_v30 = vmul.f32 %v4387_v29, %v4387_v29  ;;  %v758_v31 = vpop.f32.mrb[19].mxu0  ;;  %v5286_v32 = vadd.f32 1e-12, %v860_v27 }
 0x123   : > { %v5288_v33 = vadd.f32 1e-12, %v859_v28  ;;  %v845_v34 = vmul.f32 %v758_v31, %v758_v31  ;;  %v5347_v31 = vmul.f32 %v5284_v20, %v5284_v20 }
 0x124   : > { %v862_v39 = vadd.f32 %v846_v30, %v830_v35  ;;  %vm900_vm3 = vcmp.eq.f32.partialorder %v5286_v32, inf  ;;  %v903_v5 = vand.u32 2147483648, %v5286_v32  ;;  %vm902_vm15 = vcmp.eq.f32.partialorder %v5286_v32, 0.0 }
 0x125   : > { %4989 = vrsqrt.f32 %v5288_v33  ;;  %v4390_v37 = vpop.f32.mrb[20].mxu0  ;;  %v861_v40 = vadd.f32 %v845_v34, %v829_v36  ;;  %vm893_vm4 = vcmp.eq.f32.partialorder %v5288_v33, inf  ;;  %vm895_vm5 = vcmp.eq.f32.partialorder %v5288_v33, 0.0 }
 0x126   : > { %v848_v41 = vmul.f32 %v4390_v37, %v4390_v37  ;;  %v768_v42 = vpop.f32.mrb[21].mxu0  ;;  %4991 = vrsqrt.f32 %v5286_v32  ;;  %v5297_v46 = vadd.f32 1e-12, %v862_v39  ;;  %v896_v6 = vand.u32 2147483648, %v5288_v33 }
 0x127   : > { %v847_v44 = vmul.f32 %v768_v42, %v768_v42  ;;  %v5299_v47 = vadd.f32 1e-12, %v861_v40 }
 0x128   : > { %v864_v48 = vadd.f32 %v848_v41, %v832_v38  ;;  %4993 = vrsqrt.f32 %v5297_v46  ;;  %v917_v11 = vand.u32 2147483648, %v5297_v46  ;;  %vm914_vm6 = vcmp.eq.f32.partialorder %v5297_v46, inf }
 0x129   : > { %v863_v49 = vadd.f32 %v847_v44, %v831_v43  ;;  %v4393_v50 = vpop.f32.mrb[22].mxu0  ;;  %4995 = vrsqrt.f32 %v5299_v47  ;;  %v910_v16 = vand.u32 2147483648, %v5299_v47  ;;  %vm907_vm7 = vcmp.eq.f32.partialorder %v5299_v47, inf }
 0x12a   : > { %v778_v51 = vpop.f32.mrb[23].mxu0  ;;  %v5307_v54 = vadd.f32 1e-12, %v864_v48  ;;  %v850_v56 = vmul.f32 %v4393_v50, %v4393_v50 }
 0x12b   : > { %v5309_v55 = vadd.f32 1e-12, %v863_v49  ;;  %v849_v57 = vmul.f32 %v778_v51, %v778_v51 }
 0x12c   : > { %4997 = vrsqrt.f32 %v5307_v54  ;;  %v866_v7 = vadd.f32 %v850_v56, %v834_v52  ;;  %vm928_vm8 = vcmp.eq.f32.partialorder %v5307_v54, inf  ;;  %vm930_vm9 = vcmp.eq.f32.partialorder %v5307_v54, 0.0 }
 0x12d   : > { %v4396_v62 = vpop.f32.mrb[24].mxu0  ;;  %4999 = vrsqrt.f32 %v5309_v55  ;;  %v865_v8 = vadd.f32 %v849_v57, %v833_v58  ;;  %v931_v29 = vand.u32 2147483648, %v5307_v54  ;;  %vm921_vm10 = vcmp.eq.f32.partialorder %v5309_v55, inf }
 0x12e   : > { %v788_v2 = vpop.f32.mrb[25].mxu0  ;;  %v852_v12 = vmul.f32 %v4396_v62, %v4396_v62  ;;  %v5329_v17 = vadd.f32 1e-12, %v866_v7  ;;  %vm923_vm11 = vcmp.eq.f32.partialorder %v5309_v55, 0.0  ;;  %v924_v37 = vand.u32 2147483648, %v5309_v55 }
 0x12f   : > { %v4990_v3 = vpop.eup %4989  ;;  %v851_v13 = vmul.f32 %v788_v2, %v788_v2  ;;  %v5331_v18 = vadd.f32 1e-12, %v865_v8  ;;  %v5414_v8 = vld [vmem:[%s6474_s7] ss:$0 sm:$0xff] }
 0x130   : > { %v4992_v9 = vpop.eup %4991  ;;  %v892_v10 = vmul.f32 %v4990_v3, %v5288_v33  ;;  %v868_v22 = vadd.f32 %v852_v12, %v836_v59  ;;  %5001 = vrsqrt.f32 %v5329_v17  ;;  %vm942_vm12 = vcmp.eq.f32.partialorder %v5329_v17, inf }
 0x131   : > { %v4399_v14 = vpop.f32.mrb[26].mxu0  ;;  %v867_v23 = vadd.f32 %v851_v13, %v835_v60  ;;  %v899_v27 = vmul.f32 %v4992_v9, %v5286_v32  ;;  %5003 = vrsqrt.f32 %v5331_v18  ;;  %vm944_vm13 = vcmp.eq.f32.partialorder %v5329_v17, 0.0 }
 0x132   : > { %v798_v21 = vpop.f32.mrb[27].mxu0  ;;  %v854_v24 = vmul.f32 %v4399_v14, %v4399_v14  ;;  %v4994_v26 = vpop.eup %4993  ;;  %v894_v28 = vsel %vm893_vm4, %v5288_v33, %v892_v10  ;;  %v5350_v34 = vadd.f32 1e-12, %v868_v22  ;;  %v945_v52 = vand.u32 2147483648, %v5329_v17 }
 0x133   : > { %v853_v25 = vmul.f32 %v798_v21, %v798_v21  ;;  %v4996_v19 = vpop.eup %4995  ;;  %v5352_v35 = vadd.f32 1e-12, %v867_v23  ;;  %v5358_v42 = vsel %vm900_vm3, %v5286_v32, %v899_v27  ;;  %v913_v20 = vmul.f32 %v4994_v26, %v5297_v46 }
 0x134   : > { %v870_v38 = vadd.f32 %v854_v24, %v838_v61  ;;  %5005 = vrsqrt.f32 %v5350_v34  ;;  %v5364_v43 = vsel %vm895_vm5, %v896_v6, %v894_v28  ;;  %v906_v48 = vmul.f32 %v4996_v19, %v5299_v47 }
 0x135   : > { %v4402_v30 = vpop.f32.mrb[28].mxu0  ;;  %v869_v39 = vadd.f32 %v853_v25, %v837_v63  ;;  %5007 = vrsqrt.f32 %v5352_v35  ;;  %vm935_vm14 = vcmp.eq.f32.partialorder %v5331_v18, inf  ;;  %vm937_vm1 = vcmp.eq.f32.partialorder %v5331_v18, 0.0 }
 0x136   : > { %v808_v36 = vpop.f32.mrb[29].mxu0  ;;  %v856_v40 = vmul.f32 %v4402_v30, %v4402_v30  ;;  %v4998_v41 = vpop.eup %4997  ;;  %v5374_v33 = vadd.f32 1e-12, %v870_v38  ;;  %v5387_v61 = vsel %vm914_vm6, %v5297_v46, %v913_v20  ;;  %v938_v63 = vand.u32 2147483648, %v5331_v18 }
 0x137   : > { %v5000_v44 = vpop.eup %4999  ;;  %v927_v49 = vmul.f32 %v4998_v41, %v5307_v54  ;;  %v5381_v58 = vadd.f32 1e-12, %v869_v39  ;;  %v855_v60 = vmul.f32 %v808_v36, %v808_v36  ;;  %v908_v2 = vsel %vm907_vm7, %v5299_v47, %v906_v48 }
 0x138   : > { %v920_v51 = vmul.f32 %v5000_v44, %v5309_v55  ;;  %v872_v59 = vadd.f32 %v856_v40, %v5311_v0  ;;  %5009 = vrsqrt.f32 %v5374_v33  ;;  %vm956_vm3 = vcmp.eq.f32.partialorder %v5350_v34, inf }
 0x139   : > { %v4405_v50 = vpop.f32.mrb[30].mxu0  ;;  %v929_v57 = vsel %vm928_vm8, %v5307_v54, %v927_v49  ;;  %vm958_vm4 = vcmp.eq.f32.partialorder %v5350_v34, 0.0  ;;  %vm909_vm5 = vcmp.eq.f32.partialorder %v5299_v47, 0.0  ;;  %v959_v7 = vand.u32 2147483648, %v5350_v34 }
 0x13a   : > { %v818_v56 = vpop.f32.mrb[31].mxu0  ;;  %v922_v62 = vsel %vm921_vm10, %v5309_v55, %v920_v51  ;;  %v5399_v0 = vsel %vm930_vm9, %v931_v29, %v929_v57  ;;  %v5002_v3 = vpop.eup %5001  ;;  %vm949_vm6 = vcmp.eq.f32.partialorder %v5352_v35, inf  ;;  %5011 = vrsqrt.f32 %v5381_v58 }
 0x13b   : > { %v5406_v6 = vsel %vm923_vm11, %v924_v37, %v922_v62  ;;  %v5004_v54 = vpop.eup %5003  ;;  %v941_v9 = vmul.f32 %v5002_v3, %v5329_v17  ;;  %vm951_vm7 = vcmp.eq.f32.partialorder %v5352_v35, 0.0  ;;  %v952_v55 = vand.u32 2147483648, %v5352_v35 }
 0x13c   : > { %v5419_v10 = vadd.f32 1e-12, %v872_v59  ;;  %v871_v12 = vadd.f32 %v855_v60, %v5313_v1  ;;  %vm916_vm8 = vcmp.eq.f32.partialorder %v5297_v46, 0.0  ;;  %v1013_v13 = vsub.f32 %v5399_v0, %v5414_v8 }
 0x13d   : > { %v934_v14 = vmul.f32 %v5004_v54, %v5331_v18  ;;  %vm970_vm9 = vcmp.eq.f32.partialorder %v5374_v33, inf  ;;  %v858_v21 = vmul.f32 %v4405_v50, %v4405_v50  ;;  %v1012_v22 = vsub.f32 %v5406_v6, %v5414_v8 }
 0x13e   : > { %v943_v23 = vsel %vm942_vm12, %v5329_v17, %v941_v9  ;;  %vm972_vm10 = vcmp.eq.f32.partialorder %v5374_v33, 0.0  ;;  %v973_v1 = vand.u32 2147483648, %v5374_v33  ;;  %5013 = vrsqrt.f32 %v5419_v10  ;;  %v5006_v24 = vpop.eup %5005 }
 0x13f   : > { %v936_v25 = vsel %vm935_vm14, %v5331_v18, %v934_v14  ;;  %vm963_vm11 = vcmp.eq.f32.partialorder %v5381_v58, inf  ;;  %v5439_v26 = vadd.f32 1e-12, %v871_v12  ;;  %v857_v27 = vmul.f32 %v818_v56, %v818_v56  ;;  %v5008_v19 = vpop.eup %5007 }
 0x140   : > { %v5443_v28 = vsel %vm944_vm13, %v945_v52, %v943_v23  ;;  %v955_v29 = vmul.f32 %v5006_v24, %v5350_v34  ;;  %vm965_vm12 = vcmp.eq.f32.partialorder %v5381_v58, 0.0  ;;  %v966_v30 = vand.u32 2147483648, %v5381_v58 }
 0x141   : > { %v874_v36 = vadd.f32 %v858_v21, %v5326_v15  ;;  %v939_v37 = vsel %vm937_vm1, %v938_v63, %v936_v25  ;;  %v948_v38 = vmul.f32 %v5008_v19, %v5352_v35  ;;  %5015 = vrsqrt.f32 %v5439_v26 }
 0x142   : > { %v904_v17 = vsel %vm902_vm15, %v903_v5, %v5358_v42  ;;  %v957_v39 = vsel %vm956_vm3, %v5350_v34, %v955_v29  ;;  %vm984_vm13 = vcmp.eq.f32.partialorder %v5419_v10, inf  ;;  %v987_v15 = vand.u32 2147483648, %v5419_v10  ;;  %v5010_v40 = vpop.eup %5009 }
 0x143   : > { %v5463_v18 = vadd.f32 1e-12, %v874_v36  ;;  %v1015_v41 = vsub.f32 %v5443_v28, %v5414_v8  ;;  %v5469_v20 = vsel %vm958_vm4, %v959_v7, %v957_v39  ;;  %v950_v32 = vsel %vm949_vm6, %v5352_v35, %v948_v38 }
 0x144   : > { %v873_v5 = vadd.f32 %v857_v27, %v5347_v31  ;;  %v1014_v42 = vsub.f32 %v939_v37, %v5414_v8  ;;  %v969_v44 = vmul.f32 %v5010_v40, %v5374_v33  ;;  %vm986_vm14 = vcmp.eq.f32.partialorder %v5419_v10, 0.0  ;;  %v5012_v48 = vpop.eup %5011 }
 0x145   : > { %5017 = vrsqrt.f32 %v5463_v18  ;;  %v911_v34 = vsel %vm909_vm5, %v910_v16, %v908_v2  ;;  %v1017_v49 = vsub.f32 %v5469_v20, %v5414_v8  ;;  %v5487_v31 = vsel %vm951_vm7, %v952_v55, %v950_v32 }
 0x146   : > { %vm977_vm15 = vcmp.eq.f32.partialorder %v5439_v26, inf  ;;  %v980_v50 = vand.u32 2147483648, %v5439_v26  ;;  %v971_v51 = vsel %vm970_vm9, %v5374_v33, %v969_v44  ;;  %v962_v52 = vmul.f32 %v5012_v48, %v5381_v58 }
 0x147   : > { %vm979_vm1 = vcmp.eq.f32.partialorder %v5439_v26, 0.0  ;;  %v5496_v47 = vadd.f32 1e-12, %v873_v5  ;;  %v918_v16 = vsel %vm916_vm8, %v917_v11, %v5387_v61  ;;  %v5505_v35 = vsel %vm972_vm10, %v973_v1, %v971_v51 }
 0x148   : > { %v1008_v56 = vsub.f32 %v5364_v43, %v5414_v8  ;;  %v1009_v57 = vsub.f32 %v904_v17, %v5414_v8  ;;  %v1010_v59 = vsub.f32 %v911_v34, %v5414_v8  ;;  %v5014_v60 = vpop.eup %5013  ;;  %v1016_v62 = vsub.f32 %v5487_v31, %v5414_v8 }
 0x149   : > { %v964_v46 = vsel %vm963_vm11, %v5381_v58, %v962_v52  ;;  %vm998_vm3 = vcmp.eq.f32.partialorder %v5463_v18, inf  ;;  %5019 = vrsqrt.f32 %v5496_v47  ;;  %v1019_v11 = vsub.f32 %v5505_v35, %v5414_v8 }
 0x14a   : > { %v5522_v43 = vsel %vm965_vm12, %v966_v30, %v964_v46  ;;  %v983_v33 = vmul.f32 %v5014_v60, %v5419_v10  ;;  %vm1000_vm4 = vcmp.eq.f32.partialorder %v5463_v18, 0.0  ;;  %v1001_v61 = vand.u32 2147483648, %v5463_v18 }
 0x14b   : > { %vm1055_vm5 = vsmask.f32 7424  ;;  %v994_v63 = vand.u32 2147483648, %v5496_v47  ;;  %v1011_v2 = vsub.f32 %v918_v16, %v5414_v8  ;;  %v1024_v3 = vmax.f32 %v1008_v56, 0.0  ;;  %v5016_v54 = vpop.eup %5015 }
 0x14c   : > { %v1025_v7 = vmax.f32 %v1009_v57, 0.0  ;;  %vm1128_vm6 = vcmask 162816   ;;  %v985_v58 = vsel %vm984_vm13, %v5419_v10, %v983_v33  ;;  %v1026_v9 = vmax.f32 %v1010_v59, 0.0 }
 0x14d   : > { %v1028_v55 = vmax.f32 %v1012_v22, 0.0  ;;  %v1029_v12 = vmax.f32 %v1013_v13, 0.0  ;;  %v1018_v14 = vsub.f32 %v5522_v43, %v5414_v8  ;;  %v976_v21 = vmul.f32 %v5016_v54, %v5439_v26 }
 0x14e   : > { %vm991_vm7 = vcmp.eq.f32.partialorder %v5496_v47, inf  ;;  %v1027_v23 = vmax.f32 %v1011_v2, 0.0  ;;  %v5542_v1 = vpack.c.bf16 %v1025_v7, %v1024_v3  ;;  %v988_v24 = vsel %vm986_vm14, %v987_v15, %v985_v58 }
 0x14f   : > { %vm993_vm8 = vcmp.eq.f32.partialorder %v5496_v47, 0.0  ;;  %v5547_v6 = vpack.c.bf16 %v1029_v12, %v1028_v55  ;;  %v1030_v22 = vmax.f32 %v1014_v42, 0.0  ;;  %v1031_v0 = vmax.f32 %v1015_v41, 0.0  ;;  %v5018_v13 = vpop.eup %5017 }
 0x150   : > { %v978_v25 = vsel %vm977_vm15, %v5439_v26, %v976_v21  ;;  %v5552_v27 = vpack.c.bf16 %v1027_v23, %v1026_v9  ;;  %v1057_v19 = vshrl.u32 %v5542_v1, 16  ;;  %v1059_v28 = vshll.u32 %v5542_v1, 16 }
 0x151   : > { %v981_v10 = vsel %vm979_vm1, %v980_v50, %v978_v25  ;;  %v997_v29 = vmul.f32 %v5018_v13, %v5463_v18  ;;  %v1072_v30 = vshll.u32 %v5547_v6, 16  ;;  %v5560_v36 = vpack.c.bf16 %v1031_v0, %v1030_v22 }
 0x152   : > { %v1021_v37 = vsub.f32 %v988_v24, %v5414_v8  ;;  %v1020_v38 = vsub.f32 %v981_v10, %v5414_v8  ;;  %v1061_v17 = vrot.slane %v1059_v28, 1  ;;  %v1064_v39 = vshll.u32 %v5552_v27, 16 }
 0x153   : > { %v999_v26 = vsel %vm998_vm3, %v5463_v18, %v997_v29  ;;  %v1068_v15 = vshrl.u32 %v5552_v27, 16  ;;  %v5571_v40 = vrot.slane %v1057_v19, 1  ;;  %v1074_v41 = vrot.slane %v1072_v30, 1  ;;  %v5020_v32 = vpop.eup %5019 }
 0x154   : > { %vm1391_vm9 = vcmask 1046528   ;;  %v1002_v5 = vsel %vm1000_vm4, %v1001_v61, %v999_v26  ;;  %v1062_v42 = vor.u32 %v1061_v17, %v1057_v19  ;;  %v1066_v44 = vrot.slane %v1064_v39, 1 }
 0x155   : > { %v5575_v34 = vrot.slane %v1072_v30, 2  ;;  %v990_v48 = vmul.f32 %v5020_v32, %v5496_v47  ;;  %v5578_v31 = vrot.slane %v1064_v39, 2  ;;  %v1076_v50 = vshrl.u32 %v5547_v6, 16 }
 0x156   : > { %v1080_v51 = vshll.u32 %v5560_v36, 16  ;;  %v1067_v52 = vsel %vm1055_vm5, %v1062_v42, %v1066_v44  ;;  %v1070_v16 = vor.u32 %v1068_v15, %v1066_v44  ;;  %v1032_v56 = vmax.f32 %v1016_v62, 0.0 }
 0x157   : > { %v1033_v18 = vmax.f32 %v1017_v49, 0.0  ;;  %v1023_v57 = vsub.f32 %v1002_v5, %v5414_v8  ;;  %v992_v59 = vsel %vm991_vm7, %v5496_v47, %v990_v48  ;;  %4410 = vmatprep.mubr.msk.bf16.mxu1 %vm1128_vm6, %v1067_v52  ;;  %v1078_v60 = vor.u32 %v1076_v50, %v1074_v41 }
 0x158   : > { %v1082_v46 = vrot.slane %v1080_v51, 1  ;;  %v995_v43 = vsel %vm993_vm8, %v994_v63, %v992_v59  ;;  %v1075_v62 = vsel %vm1055_vm5, %v1070_v16, %v1074_v41  ;;  %v1084_v20 = vshrl.u32 %v5560_v36, 16 }
 0x159   : > { %v5598_v33 = vpack.c.bf16 %v1033_v18, %v1032_v56  ;;  %v1022_v49 = vsub.f32 %v995_v43, %v5414_v8  ;;  %4411 = vmatmul.mubr.msk.bf16.vlgmr.msra.gmra.mrb[0].mxu1 %vm1128_vm6, %v1075_v62  ;;  %v1034_v2 = vmax.f32 %v1018_v14, 0.0  ;;  %v1035_v3 = vmax.f32 %v1019_v11, 0.0  ;;  %v5617_v8 = vld [vmem:[%s6469_s2 + $0x18] sm:$0xff]  }
 0x15a   : > { %v1083_v61 = vsel %vm1055_vm5, %v1078_v60, %v1082_v46  ;;  %4427 = vmatpush3.bf16.msra.mxu1 %v5279_v4  ;;  %v1568_v47 = vrot.slane %v1076_v50, 1  ;;  %v1086_v63 = vor.u32 %v1084_v20, %v1082_v46  ;;  %v1036_v54 = vmax.f32 %v1020_v38, 0.0 }
 0x15b   : > { %4414 = vmatprep.mubr.msk.bf16.mxu1 %vm1128_vm6, %v1083_v61  ;;  %v1088_v7 = vshll.u32 %v5598_v33, 16  ;;  %v5610_v58 = vpack.c.bf16 %v1035_v3, %v1034_v2  ;;  %4909 = vmatprep.subr.msk.bf16.mxu1 %vm1153_vm2, %v5295_v45  ;;  %v1037_v9 = vmax.f32 %v1021_v37, 0.0  ;;  %v1038_v55 = vmax.f32 %v1022_v49, 0.0 }
 0x15c   : > { %v1039_v12 = vmax.f32 %v1023_v57, 0.0  ;;  %v1392_v35 = vrot.slane %v5542_v1, 1  ;;  %v1393_v11 = vrot.slane %v5552_v27, 1  ;;  %v1395_v14 = vrot.slane %v5547_v6, 1 }
 0x15d   : > { %v1090_v4 = vrot.slane %v1088_v7, 1  ;;  %v1092_v21 = vshrl.u32 %v5598_v33, 16  ;;  %v1096_v23 = vshll.u32 %v5610_v58, 16  ;;  %v5624_v45 = vpack.c.bf16 %v1037_v9, %v1036_v54 }
 0x15e   : > { %v5626_v24 = vpack.c.bf16 %v1039_v12, %v1038_v55  ;;  %vm1560_vm10 = vsmask.f32 6400  ;;  %v1100_v0 = vshrl.u32 %v5610_v58, 16  ;;  %4429 = vmatpush3.bf16.msra.mxu1 %v5305_v53  ;;  %v5632_v13 = vsel %vm1391_vm9, %v1392_v35, %v1393_v11 }
 0x15f   : > { %v1091_v22 = vsel %vm1055_vm5, %v1086_v63, %v1090_v4  ;;  %v5635_v25 = vsel %vm1391_vm9, %v1393_v11, %v1395_v14  ;;  %v1094_v19 = vor.u32 %v1092_v21, %v1090_v4  ;;  %v1098_v10 = vrot.slane %v1096_v23, 1  ;;  %4446 = vmatprep.subr.bf16.mxu1 %v5617_v8 }
 0x160   : > { %v1104_v29 = vshll.u32 %v5624_v45, 16  ;;  %v1112_v30 = vshll.u32 %v5626_v24, 16  ;;  %v1108_v37 = vshrl.u32 %v5624_v45, 16  ;;  %v1397_v38 = vrot.slane %v5560_v36, 1 }
 0x161   : > { %v1399_v53 = vrot.slane %v5598_v33, 1  ;;  %v1401_v17 = vrot.slane %v5610_v58, 1  ;;  %4415 = vmatmul.mubr.msk.bf16.gmra.mrb[4].mxu1 %vm1128_vm6, %v1091_v22  ;;  %v1099_v39 = vsel %vm1055_vm5, %v1094_v19, %v1098_v10  ;;  %v1102_v26 = vor.u32 %v1100_v0, %v1098_v10 }
 0x162   : > { %v1106_v41 = vrot.slane %v1104_v29, 1  ;;  %v1114_v32 = vrot.slane %v1112_v30, 1  ;;  %4418 = vmatprep.mubr.msk.bf16.mxu1 %vm1128_vm6, %v1099_v39  ;;  %v5648_v5 = vsel %vm1391_vm9, %v1395_v14, %v1397_v38  ;;  %v1403_v48 = vrot.slane %v5624_v45, 1 }
 0x163   : > { %v5651_v42 = vsel %vm1391_vm9, %v1397_v38, %v1399_v53  ;;  %v5654_v44 = vsel %vm1391_vm9, %v1399_v53, %v1401_v17  ;;  %v1116_v16 = vshrl.u32 %v5626_v24, 16  ;;  %v1405_v56 = vrot.slane %v5626_v24, 1 }
 0x164   : > { %v1107_v50 = vsel %vm1055_vm5, %v1102_v26, %v1106_v41  ;;  %v1110_v52 = vor.u32 %v1108_v37, %v1106_v41  ;;  %v5661_v18 = vsel %vm1391_vm9, %v1401_v17, %v1403_v48  ;;  %v1562_v57 = vrot.slane %v1059_v28, 2 }
 0x165   : > { %v1564_v59 = vrot.slane %v1068_v15, 1  ;;  %v1570_v60 = vor.u32 %v5575_v34, %v1568_v47  ;;  %v5672_v43 = vsel %vm1391_vm9, %v1403_v48, %v1405_v56  ;;  %v1572_v62 = vrot.slane %v1084_v20, 1 }
 0x166   : > { %v1115_v46 = vsel %vm1055_vm5, %v1110_v52, %v1114_v32  ;;  %v1573_v49 = vrot.slane %v1080_v51, 2  ;;  %v1563_v61 = vor.u32 %v1562_v57, %v5571_v40  ;;  %v1576_v2 = vrot.slane %v1092_v21, 1  ;;  %v4954_v52 = vld [vmem:[%s6470_s3 + $0x14] sm:$0xff]   ;;  %v4955_v57 = vld [vmem:[%s6470_s3 + $0x1c] sm:$0xff]  }
 0x167   : > { %v1566_v28 = vor.u32 %v5578_v31, %v1564_v59  ;;  %v1577_v3 = vrot.slane %v1088_v7, 2  ;;  %v1580_v63 = vrot.slane %v1100_v0, 1  ;;  %v1581_v34 = vrot.slane %v1096_v23, 2  ;;  %4506 = vmatprep.subr.bf16.mxu0 %v4954_v52 }
 0x168   : > { %v1574_v15 = vor.u32 %v1573_v49, %v1572_v62  ;;  %v1584_v47 = vrot.slane %v1108_v37, 1  ;;  %v1585_v55 = vrot.slane %v1104_v29, 2  ;;  %v1588_v51 = vrot.slane %v1116_v16, 1  ;;  %4507 = vmatpush3.bf16.msra.mxu0 %v4954_v52 }
 0x169   : > { %v5679_v54 = vsel %vm1560_vm10, %v1563_v61, %v1566_v28  ;;  %v5682_v9 = vsel %vm1560_vm10, %v1566_v28, %v1570_v60  ;;  %v1578_v20 = vor.u32 %v1577_v3, %v1576_v2  ;;  %4419 = vmatmul.mubr.msk.bf16.gmra.mrb[8].mxu1 %vm1128_vm6, %v1107_v50  ;;  %v1582_v31 = vor.u32 %v1581_v34, %v1580_v63 }
 0x16a   : > { %v5686_v40 = vsel %vm1560_vm10, %v1570_v60, %v1574_v15  ;;  %vm1745_vm11 = vcmask 1045504   ;;  %4422 = vmatprep.mubr.msk.bf16.mxu1 %vm1128_vm6, %v1115_v46  ;;  %v1586_v12 = vor.u32 %v1585_v55, %v1584_v47  ;;  %v1589_v4 = vrot.slane %v1112_v30, 2  ;;  %4508 = vmatprep.subr.bf16.mxu0 %v4955_v57 }
 0x16b   : > { %v5690_v7 = vsel %vm1560_vm10, %v1574_v15, %v1578_v20  ;;  %v1746_v35 = vrot.slane %v5542_v1, 2  ;;  %v5694_v11 = vsel %vm1560_vm10, %v1578_v20, %v1582_v31  ;;  %v1747_v14 = vrot.slane %v5552_v27, 2 }
 0x16c   : > { %v1749_v21 = vrot.slane %v5547_v6, 2  ;;  %v1751_v23 = vrot.slane %v5560_v36, 2  ;;  %v1587_v22 = vsel %vm1560_vm10, %v1582_v31, %v1586_v12  ;;  %v5700_v0 = vor.u32 %v1589_v4, %v1588_v51  ;;  %4509 = vmatpush3.bf16.msra.mxu0 %v4955_v57 }
 0x16d   : > { %v1753_v19 = vrot.slane %v5598_v33, 2  ;;  %v1755_v10 = vrot.slane %v5610_v58, 2  ;;  %v1748_v29 = vsel %vm1745_vm11, %v1746_v35, %v1747_v14  ;;  %v1757_v38 = vrot.slane %v5624_v45, 2  ;;  %v5828_v35 = vld [vmem:[%s6470_s3 + $0x10] ss:$0 sps:$4 sm:$0xff]  }
 0x16e   : > { %v1750_v30 = vsel %vm1745_vm11, %v1747_v14, %v1749_v21  ;;  %v1752_v37 = vsel %vm1745_vm11, %v1749_v21, %v1751_v23  ;;  %v1591_v53 = vsel %vm1560_vm10, %v1586_v12, %v5700_v0  ;;  %v1759_v26 = vrot.slane %v5626_v24, 2 }
 0x16f   : > { %v1754_v17 = vsel %vm1745_vm11, %v1751_v23, %v1753_v19  ;;  %v1756_v39 = vsel %vm1745_vm11, %v1753_v19, %v1755_v10  ;;  %v1118_v41 = vor.u32 %v1116_v16, %v1114_v32  ;;  %v1758_v48 = vsel %vm1745_vm11, %v1755_v10, %v1757_v38  ;;  %v4949_v32 = vld [vmem:[%s6469_s2 + $0x20] ss:$0 sps:$4 sm:$0x33]   ;;  %v4950_v16 = vld [vmem:[%s6469_s2 + $0x24] sm:$0xff]  }
 0x170   : > { %v1760_v50 = vsel %vm1745_vm11, %v1757_v38, %v1759_v26  ;;  %vm2084_vm12 = vcmask 326656   ;;  %vm3049_vm13 = vcmask 490496   ;;  %vm3559_vm14 = vcmask 654336  }
 0x171   : > { %4423 = vmatmul.mubr.msk.bf16.gmra.mrb[12].mxu1 %vm1128_vm6, %v1118_v41 }
 0x172   : > { %4430 = vmatprep.mubr.msk.bf16.mxu1 %vm1128_vm6, %v5542_v1  ;;  %v1441_v1 = vsel %vm1153_vm2, %v4949_v32, 0 }
 0x179   : > { %4431 = vmatmul.mubr.msk.bf16.vlgmr.msra.gmra.mrb[0].mxu1 %vm1128_vm6, %v5552_v27 }
 0x17a   : > { %4447 = vmatpush3.bf16.msra.mxu1 %v5617_v8  ;;  %4434 = vmatprep.mubr.msk.bf16.mxu1 %vm1128_vm6, %v5547_v6  ;;  %v4951_v6 = vld [vmem:[%s6469_s2 + $0x2c] ss:$0 sps:$4 sm:$0x33]   ;;  %v4956_v8 = vld [vmem:[%s6470_s3 + $0x24] ss:$0 sps:$4 sm:$0xff]  }
 0x17b   : > { %4910 = vmatprep.subr.msk.bf16.mxu1 %vm1153_vm2, %v4949_v32  ;;  %v1626_v27 = vsel %vm1153_vm2, %v4951_v6, 0 }
 0x17e   : > { %4449 = vmatpush3.bf16.msra.mxu1 %v1441_v1 }
 0x17f   : > { %4466 = vmatprep.subr.bf16.mxu1 %v4950_v16 }
 0x181   : > { %4435 = vmatmul.mubr.msk.bf16.gmra.mrb[4].mxu1 %vm1128_vm6, %v5560_v36  ;;  %v4952_v36 = vld [vmem:[%s6469_s2 + $0x30] sm:$0xff]  }
 0x182   : > { %4438 = vmatprep.mubr.msk.bf16.mxu1 %vm1128_vm6, %v5598_v33  ;;  %v4953_v33 = vld [vmem:[%s6469_s2 + $0x38] ss:$0 sps:$4 sm:$0x33]  }
 0x189   : > { %4439 = vmatmul.mubr.msk.bf16.gmra.mrb[8].mxu1 %vm1128_vm6, %v5610_v58  ;;  %v1795_v58 = vsel %vm1153_vm2, %v4953_v33, 0 }
 0x18a   : > { %4442 = vmatprep.mubr.msk.bf16.mxu1 %vm1128_vm6, %v5624_v45 }
 0x191   : > { %4443 = vmatmul.mubr.msk.bf16.gmra.mrb[12].mxu1 %vm1128_vm6, %v5626_v24  ;;  %v5807_v24 = vld [vmem:[%s6470_s3] sm:$0xff]  }
 0x192   : > { %4450 = vmatprep.mubr.msk.bf16.mxu1 %vm1128_vm6, %v5632_v13  ;;  %v5813_v13 = vld [vmem:[%s6474_s7 + $0x1] ss:$0 sm:$0xff] }
 0x199   : > { %4451 = vmatmul.mubr.msk.bf16.vlgmr.msra.gmra.mrb[0].mxu1 %vm1128_vm6, %v5635_v25 }
 0x19a   : > { %4467 = vmatpush3.bf16.msra.mxu1 %v4950_v16  ;;  %4454 = vmatprep.mubr.msk.bf16.mxu1 %vm1128_vm6, %v5648_v5 }
 0x19b   : > { %4911 = vmatprep.subr.msk.bf16.mxu1 %vm1153_vm2, %v4951_v6 }
 0x19e   : > { %4469 = vmatpush3.bf16.msra.mxu1 %v1626_v27 }
 0x19f   : > { %4486 = vmatprep.subr.bf16.mxu1 %v4952_v36 }
 0x1a1   : > { %4455 = vmatmul.mubr.msk.bf16.gmra.mrb[4].mxu1 %vm1128_vm6, %v5651_v42 }
 0x1a2   : > { %4458 = vmatprep.mubr.msk.bf16.mxu1 %vm1128_vm6, %v5654_v44 }
 0x1a9   : > { %4459 = vmatmul.mubr.msk.bf16.gmra.mrb[8].mxu1 %vm1128_vm6, %v5661_v18 }
 0x1aa   : > { %4462 = vmatprep.mubr.msk.bf16.mxu1 %vm1128_vm6, %v5672_v43 }
 0x1b1   : > { %4463 = vmatmul.mubr.msk.bf16.gmra.mrb[12].mxu1 %vm1128_vm6, %v1405_v56 }
 0x1b2   : > { %4470 = vmatprep.mubr.msk.bf16.mxu1 %vm1128_vm6, %v5679_v54 }
 0x1b9   : > { %4471 = vmatmul.mubr.msk.bf16.vlgmr.msra.gmra.mrb[0].mxu1 %vm1128_vm6, %v5682_v9 }
 0x1ba   : > { %4487 = vmatpush3.bf16.msra.mxu1 %v4952_v36  ;;  %4474 = vmatprep.mubr.msk.bf16.mxu1 %vm1128_vm6, %v5686_v40 }
 0x1bb   : > { %4912 = vmatprep.subr.msk.bf16.mxu1 %vm1153_vm2, %v4953_v33  ;;  %vm2109_vm2 = vcmask 1043456  }
 0x1bc   : > { %4913 = vmatprep.subr.msk.bf16.mxu0 %vm2109_vm2, %v4956_v8  ;;  %v2111_v45 = vsel %vm2109_vm2, %v4956_v8, 0 }
 0x1bd   : > { %4511 = vmatpush3.bf16.msra.mxu0 %v2111_v45 }
 0x1be   : > { %4489 = vmatpush3.bf16.msra.mxu1 %v1795_v58  ;;  %4528 = vmatprep.subr.bf16.mxu0 %v5807_v24 }
 0x1c1   : > { %4475 = vmatmul.mubr.msk.bf16.gmra.mrb[4].mxu1 %vm1128_vm6, %v5690_v7 }
 0x1c2   : > { %4478 = vmatprep.mubr.msk.bf16.mxu1 %vm1128_vm6, %v5694_v11 }
 0x1c9   : > { %4479 = vmatmul.mubr.msk.bf16.gmra.mrb[8].mxu1 %vm1128_vm6, %v1587_v22 }
 0x1ca   : > { %4482 = vmatprep.mubr.msk.bf16.mxu1 %vm1128_vm6, %v1591_v53 }
 0x1d1   : > { %4483 = vmatmul.mubr.msk.bf16.gmra.mrb[12].mxu1 %vm1128_vm6, %v5700_v0 }
 0x1d2   : > { %4490 = vmatprep.mubr.msk.bf16.mxu1 %vm1128_vm6, %v1748_v29  ;;  %v5835_v29 = vsel %vm2109_vm2, %v5828_v35, 0 }
 0x1d9   : > { %4491 = vmatmul.mubr.msk.bf16.vlgmr.msra.gmra.mrb[0].mxu1 %vm1128_vm6, %v1750_v30 }
 0x1da   : > { %4494 = vmatprep.mubr.msk.bf16.mxu1 %vm1128_vm6, %v1752_v37 }
 0x1e1   : > { %4495 = vmatmul.mubr.msk.bf16.gmra.mrb[4].mxu1 %vm1128_vm6, %v1754_v17 }
 0x1e2   : > { %4498 = vmatprep.mubr.msk.bf16.mxu1 %vm1128_vm6, %v1756_v39 }
 0x1e9   : > { %4499 = vmatmul.mubr.msk.bf16.gmra.mrb[8].mxu1 %vm1128_vm6, %v1758_v48 }
 0x1ea   : > { %4502 = vmatprep.mubr.msk.bf16.mxu1 %vm1128_vm6, %v1760_v50 }
 0x1f1   : > { %4503 = vmatmul.mubr.msk.bf16.gmra.mrb[12].mxu1 %vm1128_vm6, %v1759_v26 }
 0x2ac   : > { %v4492_v25 = vpop.f32.mrb[0].mxu1 }
 0x2ad   : > { %v1917_v5 = vadd.f32 %v4492_v25, %v5813_v13  ;;  %v1831_v42 = vpop.f32.mrb[1].mxu1 }
 0x2ae   : > { %v1915_v44 = vadd.f32 %v5813_v13, %v1831_v42  ;;  %v4493_v56 = vpop.f32.mrb[2].mxu1 }
 0x2af   : > { %v1933_v18 = vmax.f32 %v1917_v5, 0.0  ;;  %v1918_v59 = vadd.f32 %v4493_v56, %v5813_v13  ;;  %v1834_v60 = vpop.f32.mrb[3].mxu1 }
 0x2b0   : > { %v1931_v46 = vmax.f32 %v1915_v44, 0.0  ;;  %v1916_v43 = vadd.f32 %v5813_v13, %v1834_v60 }
 0x2b1   : > { %v1934_v62 = vmax.f32 %v1918_v59, 0.0  ;;  %v1967_v61 = vrot.slane %v1933_v18, 1 }
 0x2b2   : > { %v1932_v49 = vmax.f32 %v1916_v43, 0.0  ;;  %v1964_v2 = vrot.slane %v1931_v46, 1 }
 0x2b3   : > { %v1969_v28 = vrot.slane %v1934_v62, 1 }
 0x2b4   : > { %v1965_v3 = vrot.slane %v1932_v49, 1  ;;  %v4496_v15 = vpop.f32.mrb[4].mxu1 }
 0x2b5   : > { %v1970_v63 = vsel %vm1391_vm9, %v1967_v61, %v1969_v28  ;;  %v1921_v34 = vadd.f32 %v4496_v15, %v5813_v13  ;;  %v1847_v47 = vpop.f32.mrb[5].mxu1 }
 0x2b6   : > { %v2013_v54 = vmax.f32 %v1933_v18, %v1970_v63  ;;  %v1966_v9 = vsel %vm1391_vm9, %v1964_v2, %v1965_v3  ;;  %v1968_v20 = vsel %vm1391_vm9, %v1965_v3, %v1967_v61  ;;  %v1919_v55 = vadd.f32 %v5813_v13, %v1847_v47  ;;  %v4497_v40 = vpop.f32.mrb[6].mxu1 }
 0x2b7   : > { %v2011_v31 = vmax.f32 %v1931_v46, %v1966_v9  ;;  %v2012_v51 = vmax.f32 %v1932_v49, %v1968_v20  ;;  %v1937_v7 = vmax.f32 %v1921_v34, 0.0  ;;  %v1922_v12 = vadd.f32 %v4497_v40, %v5813_v13  ;;  %v1850_v4 = vpop.f32.mrb[7].mxu1  ;;  %v4958_v34 = vld [vmem:[%s6470_s3 + $0x8] sm:$0xff]  }
 0x2b8   : > { %v1935_v11 = vmax.f32 %v1919_v55, 0.0  ;;  %v1920_v14 = vadd.f32 %v5813_v13, %v1850_v4 }
 0x2b9   : > { %v5831_v21 = vpack.c.bf16 %v2012_v51, %v2011_v31  ;;  %v1938_v23 = vmax.f32 %v1922_v12, 0.0  ;;  %v1975_v19 = vrot.slane %v1937_v7, 1 }
 0x2ba   : > { %v1971_v22 = vrot.slane %v1935_v11, 1  ;;  %v1936_v0 = vmax.f32 %v1920_v14, 0.0 }
 0x2bb   : > { %v1977_v10 = vrot.slane %v1938_v23, 1  ;;  %v2054_v53 = vrot.slane %v5831_v21, 1  ;;  %v2353_v17 = vrot.slane %v5831_v21, 2  ;;  %v2528_v50 = vrot.slane %v5831_v21, 3 }
 0x2bc   : > { %v1972_v30 = vsel %vm1391_vm9, %v1969_v28, %v1971_v22  ;;  %v1973_v37 = vrot.slane %v1936_v0, 1  ;;  %v4500_v38 = vpop.f32.mrb[8].mxu1  ;;  %v2703_v5 = vrot.slane %v5831_v21, 4 }
 0x2bd   : > { %v2014_v39 = vmax.f32 %v1934_v62, %v1972_v30  ;;  %v1978_v26 = vsel %vm1391_vm9, %v1975_v19, %v1977_v10  ;;  %v1925_v41 = vadd.f32 %v4500_v38, %v5813_v13  ;;  %v1863_v48 = vpop.f32.mrb[9].mxu1 }
 0x2be   : > { %v2017_v52 = vmax.f32 %v1937_v7, %v1978_v26  ;;  %v1974_v57 = vsel %vm1391_vm9, %v1971_v22, %v1973_v37  ;;  %v1976_v32 = vsel %vm1391_vm9, %v1973_v37, %v1975_v19  ;;  %v1923_v1 = vadd.f32 %v5813_v13, %v1863_v48  ;;  %v4501_v16 = vpop.f32.mrb[10].mxu1 }
 0x2bf   : > { %v5846_v6 = vpack.c.bf16 %v2014_v39, %v2013_v54  ;;  %v2015_v27 = vmax.f32 %v1935_v11, %v1974_v57  ;;  %v2016_v36 = vmax.f32 %v1936_v0, %v1976_v32  ;;  %v1941_v33 = vmax.f32 %v1925_v41, 0.0  ;;  %v1866_v58 = vpop.f32.mrb[11].mxu1 }
 0x2c0   : > { %v1939_v8 = vmax.f32 %v1923_v1, 0.0  ;;  %v5849_v45 = vadd.f32 %v4501_v16, %v5813_v13  ;;  %v1924_v25 = vadd.f32 %v5813_v13, %v1866_v58 }
 0x2c1   : > { %v5853_v42 = vpack.c.bf16 %v2016_v36, %v2015_v27  ;;  %v1983_v44 = vrot.slane %v1941_v33, 1  ;;  %v2055_v56 = vrot.slane %v5846_v6, 1  ;;  %v2354_v18 = vrot.slane %v5846_v6, 2  ;;  %v4960_v27 = vld [vmem:[%s6470_s3 + $0x28] sm:$0xff]  }
 0x2c2   : > { %v1979_v59 = vrot.slane %v1939_v8, 1  ;;  %v1942_v60 = vmax.f32 %v5849_v45, 0.0  ;;  %v1940_v46 = vmax.f32 %v1924_v25, 0.0  ;;  %v2529_v43 = vrot.slane %v5846_v6, 3 }
 0x2c3   : > { %v2056_v62 = vsel %vm1391_vm9, %v2054_v53, %v2055_v56  ;;  %v2057_v49 = vrot.slane %v5853_v42, 1  ;;  %v5862_v61 = vsel %vm1745_vm11, %v2353_v17, %v2354_v18  ;;  %v2356_v28 = vrot.slane %v5853_v42, 2 }
 0x2c4   : > { %v1980_v2 = vsel %vm1391_vm9, %v1977_v10, %v1979_v59  ;;  %v1985_v3 = vrot.slane %v1942_v60, 1  ;;  %v1981_v15 = vrot.slane %v1940_v46, 1  ;;  %v4504_v63 = vpop.f32.mrb[12].mxu1  ;;  %4512 = vmatprep.mubr.msk.bf16.mxu0 %vm2084_vm12, %v2056_v62  ;;  %v5871_v47 = vsel %vm598_vm0, %v2528_v50, %v2529_v43 }
 0x2c5   : > { %v2018_v54 = vmax.f32 %v1938_v23, %v1980_v2  ;;  %v1929_v9 = vadd.f32 %v4504_v63, %v5813_v13  ;;  %v1879_v20 = vpop.f32.mrb[13].mxu1  ;;  %v2058_v55 = vsel %vm1391_vm9, %v2055_v56, %v2057_v49  ;;  %v5876_v40 = vsel %vm1745_vm11, %v2354_v18, %v2356_v28 }
 0x2c6   : > { %v1986_v31 = vsel %vm1391_vm9, %v1983_v44, %v1985_v3  ;;  %v1982_v51 = vsel %vm1391_vm9, %v1979_v59, %v1981_v15  ;;  %v1984_v7 = vsel %vm1391_vm9, %v1981_v15, %v1983_v44  ;;  %v1927_v12 = vadd.f32 %v5813_v13, %v1879_v20  ;;  %v4505_v4 = vpop.f32.mrb[14].mxu1  ;;  %4513 = vmatmul.mubr.msk.bf16.vlgmr.msra.gmra.mrb[32].mxu0 %vm2084_vm12, %v2058_v55 }
 0x2c7   : > { %v5883_v11 = vpack.c.bf16 %v2018_v54, %v2017_v52  ;;  %v2021_v14 = vmax.f32 %v1941_v33, %v1986_v31  ;;  %v2019_v23 = vmax.f32 %v1939_v8, %v1982_v51  ;;  %v2020_v22 = vmax.f32 %v1940_v46, %v1984_v7  ;;  %4529 = vmatpush3.bf16.msra.mxu0 %v5807_v24  ;;  %v1882_v0 = vpop.f32.mrb[15].mxu1 }
 0x2c8   : > { %v1945_v19 = vmax.f32 %v1929_v9, 0.0  ;;  %v1943_v10 = vmax.f32 %v1927_v12, 0.0  ;;  %v1930_v30 = vadd.f32 %v4505_v4, %v5813_v13  ;;  %v1928_v37 = vadd.f32 %v5813_v13, %v1882_v0  ;;  %4530 = vmatprep.subr.bf16.mxu0 %v4958_v34 }
 0x2c9   : > { %v5888_v38 = vpack.c.bf16 %v2020_v22, %v2019_v23  ;;  %v2059_v53 = vrot.slane %v5883_v11, 1  ;;  %v2358_v17 = vrot.slane %v5883_v11, 2  ;;  %v2531_v39 = vrot.slane %v5853_v42, 3 }
 0x2ca   : > { %v1991_v26 = vrot.slane %v1945_v19, 1  ;;  %v1987_v41 = vrot.slane %v1943_v10, 1  ;;  %v1946_v48 = vmax.f32 %v1930_v30, 0.0  ;;  %v1944_v24 = vmax.f32 %v1928_v37, 0.0 }
 0x2cb   : > { %v2060_v50 = vsel %vm1391_vm9, %v2057_v49, %v2059_v53  ;;  %v2061_v52 = vrot.slane %v5888_v38, 1  ;;  %4531 = vmatpush3.bf16.msra.mxu0 %v4958_v34  ;;  %v5896_v13 = vsel %vm1745_vm11, %v2356_v28, %v2358_v17  ;;  %v2360_v57 = vrot.slane %v5888_v38, 2 }
 0x2cc   : > { %v1988_v32 = vsel %vm1391_vm9, %v1985_v3, %v1987_v41  ;;  %v1993_v1 = vrot.slane %v1946_v48, 1  ;;  %v1989_v16 = vrot.slane %v1944_v24, 1  ;;  %4516 = vmatprep.mubr.msk.bf16.mxu0 %vm2084_vm12, %v2060_v50  ;;  %4914 = vmatprep.subr.msk.bf16.mxu0 %vm2109_vm2, %v5828_v35  ;;  %v5907_v36 = vsel %vm598_vm0, %v2529_v43, %v2531_v39 }
 0x2cd   : > { %v2022_v33 = vmax.f32 %v1942_v60, %v1988_v32  ;;  %v2062_v58 = vsel %vm1391_vm9, %v2059_v53, %v2061_v52  ;;  %v5911_v8 = vsel %vm1745_vm11, %v2358_v17, %v2360_v57  ;;  %v2533_v45 = vrot.slane %v5883_v11, 3  ;;  %v4962_v32 = vld [vmem:[%s6470_s3 + $0x38] ss:$0 sps:$4 sm:$0xff]  }
 0x2ce   : > { %v1994_v25 = vsel %vm1391_vm9, %v1991_v26, %v1993_v1  ;;  %v2026_v44 = vmax.f32 %v1946_v48, %v1993_v1  ;;  %v1990_v35 = vsel %vm1391_vm9, %v1987_v41, %v1989_v16  ;;  %v1992_v56 = vsel %vm1391_vm9, %v1989_v16, %v1991_v26  ;;  %4517 = vmatmul.mubr.msk.bf16.gmra.mrb[36].mxu0 %vm2084_vm12, %v2062_v58  ;;  %v4963_v1 = vld [vmem:[%s6470_s3 + $0x3c] sm:$0xff]   ;;  %v4973_v58 = vld [vmem:[%s6471_s4 + $0x48] sm:$0xff]  }
 0x2cf   : > { %v2032_v18 = vpack.c.bf16 %v2022_v33, %v2021_v14  ;;  %v2025_v59 = vmax.f32 %v1945_v19, %v1994_v25  ;;  %v2023_v46 = vmax.f32 %v1943_v10, %v1990_v35  ;;  %v2024_v60 = vmax.f32 %v1944_v24, %v1992_v56  ;;  %4533 = vmatpush3.bf16.msra.mxu0 %v5835_v29  ;;  %v4969_v16 = vld [vmem:[%s6471_s4 + $0x20] sm:$0xff]  }
 0x2d0   : > { %4550 = vmatprep.subr.bf16.mxu0 %v4960_v27  ;;  %v5920_v43 = vsel %vm598_vm0, %v2531_v39, %v2533_v45  ;;  %v2535_v62 = vrot.slane %v5888_v38, 3  ;;  %v2704_v49 = vrot.slane %v5846_v6, 4  ;;  %v2706_v28 = vrot.slane %v5853_v42, 4  ;;  %v4972_v33 = vld [vmem:[%s6471_s4 + $0x40] sm:$0xff]  }
 0x2d1   : > { %v5925_v2 = vpack.c.bf16 %v2026_v44, %v2025_v59  ;;  %v2033_v3 = vpack.c.bf16 %v2024_v60, %v2023_v46  ;;  %v2063_v15 = vrot.slane %v2032_v18, 1  ;;  %v2362_v63 = vrot.slane %v2032_v18, 2  ;;  %v4976_v59 = vld [vmem:[%s6471_s4 + $0x58] sm:$0x3f]  }
 0x2d2   : > { %v5928_v34 = vsel %vm598_vm0, %v2533_v45, %v2535_v62  ;;  %v2537_v54 = vrot.slane %v2032_v18, 3  ;;  %v5933_v29 = vsel %vm2109_vm2, %v2703_v5, %v2704_v49  ;;  %v5936_v9 = vsel %vm2109_vm2, %v2704_v49, %v2706_v28 }
 0x2d3   : > { %v2064_v20 = vsel %vm1391_vm9, %v2061_v52, %v2063_v15  ;;  %v2065_v55 = vrot.slane %v2033_v3, 1  ;;  %v2067_v31 = vrot.slane %v5925_v2, 1  ;;  %v2363_v51 = vsel %vm1745_vm11, %v2360_v57, %v2362_v63  ;;  %v4961_v57 = vld [vmem:[%s6470_s3 + $0x30] sm:$0xff]  }
 0x2d4   : > { %4520 = vmatprep.mubr.msk.bf16.mxu0 %vm2084_vm12, %v2064_v20  ;;  %v2364_v7 = vrot.slane %v2033_v3, 2  ;;  %v2366_v12 = vrot.slane %v5925_v2, 2  ;;  %v5944_v4 = vsel %vm598_vm0, %v2535_v62, %v2537_v54  ;;  %v2539_v5 = vrot.slane %v2033_v3, 3 }
 0x2d5   : > { %v2066_v14 = vsel %vm1391_vm9, %v2063_v15, %v2065_v55  ;;  %v2068_v23 = vsel %vm1391_vm9, %v2065_v55, %v2067_v31  ;;  %v2541_v22 = vrot.slane %v5925_v2, 3  ;;  %v2708_v0 = vrot.slane %v5883_v11, 4 }
 0x2d6   : > { %4521 = vmatmul.mubr.msk.bf16.gmra.mrb[40].mxu0 %vm2084_vm12, %v2066_v14  ;;  %v2365_v19 = vsel %vm1745_vm11, %v2362_v63, %v2364_v7  ;;  %v2367_v10 = vsel %vm1745_vm11, %v2364_v7, %v2366_v12  ;;  %v2540_v30 = vsel %vm598_vm0, %v2537_v54, %v2539_v5  ;;  %v2710_v37 = vrot.slane %v5888_v38, 4  ;;  %v6103_v14 = vld [vmem:[%s6474_s7 + $0x2] ss:$0 sm:$0xff] }
 0x2d7   : > { %4524 = vmatprep.mubr.msk.bf16.mxu0 %vm2084_vm12, %v2068_v23  ;;  %v2542_v53 = vsel %vm598_vm0, %v2539_v5, %v2541_v22  ;;  %v5960_v17 = vsel %vm2109_vm2, %v2706_v28, %v2708_v0  ;;  %v2712_v39 = vrot.slane %v2032_v18, 4  ;;  %v2714_v26 = vrot.slane %v2033_v3, 4 }
 0x2d8   : > { %v2711_v41 = vsel %vm2109_vm2, %v2708_v0, %v2710_v37  ;;  %v2716_v48 = vrot.slane %v5925_v2, 4  ;;  %vm5046_vm0 = vmmov 0   ;;  %v3369_v46 = vsel %vm1745_vm11, %v4976_v59, 0 }
 0x2d9   : > { %v2713_v24 = vsel %vm2109_vm2, %v2710_v37, %v2712_v39  ;;  %v2715_v50 = vsel %vm2109_vm2, %v2712_v39, %v2714_v26 }
 0x2da   : > { %v2717_v52 = vsel %vm2109_vm2, %v2714_v26, %v2716_v48 }
 0x2de   : > { %4525 = vmatmul.mubr.msk.bf16.gmra.mrb[44].mxu0 %vm2084_vm12, %v2067_v31 }
 0x2df   : > { %4534 = vmatprep.mubr.msk.bf16.mxu0 %vm2084_vm12, %v5831_v21  ;;  %v2408_v21 = vsel %vm2109_vm2, %v4962_v32, 0 }
 0x2e6   : > { %4535 = vmatmul.mubr.msk.bf16.vlgmr.msra.gmra.mrb[32].mxu0 %vm2084_vm12, %v5846_v6  ;;  %v4964_v6 = vld [vmem:[%s6470_s3 + $0x44] sm:$0xff]  }
 0x2e7   : > { %4551 = vmatpush3.bf16.msra.mxu0 %v4960_v27  ;;  %4538 = vmatprep.mubr.msk.bf16.mxu0 %vm2084_vm12, %v5853_v42  ;;  %v4965_v42 = vld [vmem:[%s6470_s3 + $0x4c] ss:$0 sps:$4 sm:$0xff]  }
 0x2e8   : > { %4552 = vmatprep.subr.bf16.mxu0 %v4961_v57  ;;  %v4970_v27 = vld [vmem:[%s6471_s4 + $0x28] sm:$0xff]  }
 0x2eb   : > { %4553 = vmatpush3.bf16.msra.mxu0 %v4961_v57 }
 0x2ec   : > { %4915 = vmatprep.subr.msk.bf16.mxu0 %vm2109_vm2, %v4962_v32 }
 0x2ee   : > { %4539 = vmatmul.mubr.msk.bf16.gmra.mrb[36].mxu0 %vm2084_vm12, %v5883_v11  ;;  %v4966_v11 = vld [vmem:[%s6470_s3 + $0x50] sm:$0xff]  }
 0x2ef   : > { %4542 = vmatprep.mubr.msk.bf16.mxu0 %vm2084_vm12, %v5888_v38  ;;  %4555 = vmatpush3.bf16.msra.mxu0 %v2408_v21  ;;  %v4968_v38 = vld [vmem:[%s6470_s3 + $0x60] ss:$0 sps:$4 sm:$0xff]  }
 0x2f0   : > { %4572 = vmatprep.subr.bf16.mxu0 %v4963_v1 }
 0x2f6   : > { %4543 = vmatmul.mubr.msk.bf16.gmra.mrb[40].mxu0 %vm2084_vm12, %v2032_v18  ;;  %v4975_v18 = vld [vmem:[%s6471_s4 + $0x50] sm:$0xff]  }
 0x2f7   : > { %4546 = vmatprep.mubr.msk.bf16.mxu0 %vm2084_vm12, %v2033_v3 }
 0x2fe   : > { %4547 = vmatmul.mubr.msk.bf16.gmra.mrb[48].mxu0 %vm2084_vm12, %v5925_v2 }
 0x2ff   : > { %4556 = vmatprep.mubr.msk.bf16.mxu0 %vm2084_vm12, %v5862_v61  ;;  %v2583_v61 = vsel %vm2109_vm2, %v4965_v42, 0 }
 0x306   : > { %4557 = vmatmul.mubr.msk.bf16.vlgmr.msra.gmra.mrb[32].mxu0 %vm2084_vm12, %v5876_v40  ;;  %v4967_v40 = vld [vmem:[%s6470_s3 + $0x58] sm:$0xff]  }
 0x307   : > { %4573 = vmatpush3.bf16.msra.mxu0 %v4963_v1  ;;  %4560 = vmatprep.mubr.msk.bf16.mxu0 %vm2084_vm12, %v5896_v13  ;;  %v5045_v13 = vmov 0.0  }
 0x308   : > { %4574 = vmatprep.subr.bf16.mxu0 %v4964_v6  ;;  %4616 = vmatprep.subr.bf16.mxu1 %v5045_v13 }
 0x309   : > { %4617 = vmatpush3.bf16.msra.mxu1 %v4969_v16  ;;  %4624 = vmatprep.mubr.msk.bf16.mxu1 %vm5046_vm0, %v5045_v13 }
 0x30a   : > { %4618 = vmatprep.subr.bf16.mxu1 %v5045_v13 }
 0x30b   : > { %4575 = vmatpush3.bf16.msra.mxu0 %v4964_v6 }
 0x30c   : > { %4916 = vmatprep.subr.msk.bf16.mxu0 %vm2109_vm2, %v4965_v42 }
 0x30d   : > { %4619 = vmatpush3.bf16.msra.mxu1 %v4970_v27 }
 0x30e   : > { %4561 = vmatmul.mubr.msk.bf16.gmra.mrb[36].mxu0 %vm2084_vm12, %v5911_v8  ;;  %4620 = vmatprep.subr.bf16.mxu1 %v5045_v13  ;;  %v4974_v8 = vld [vmem:[%s6471_s4 + $0x38] sm:$0x3f]  }
 0x30f   : > { %4564 = vmatprep.mubr.msk.bf16.mxu0 %vm2084_vm12, %v2363_v51  ;;  %4577 = vmatpush3.bf16.msra.mxu0 %v2583_v61  ;;  %v3072_v45 = vsel %vm1745_vm11, %v4974_v8, 0 }
 0x310   : > { %4594 = vmatprep.subr.bf16.mxu0 %v4966_v11 }
 0x316   : > { %4565 = vmatmul.mubr.msk.bf16.gmra.mrb[40].mxu0 %vm2084_vm12, %v2365_v19 }
 0x317   : > { %4568 = vmatprep.mubr.msk.bf16.mxu0 %vm2084_vm12, %v2367_v10 }
 0x31e   : > { %4569 = vmatmul.mubr.msk.bf16.gmra.mrb[52].mxu0 %vm2084_vm12, %v2366_v12 }
 0x31f   : > { %4578 = vmatprep.mubr.msk.bf16.mxu0 %vm2084_vm12, %v5871_v47  ;;  %v2758_v47 = vsel %vm2109_vm2, %v4968_v38, 0 }
 0x326   : > { %4579 = vmatmul.mubr.msk.bf16.vlgmr.msra.gmra.mrb[32].mxu0 %vm2084_vm12, %v5907_v36  ;;  %v4971_v36 = vld [vmem:[%s6471_s4 + $0x30] sm:$0xff]  }
 0x327   : > { %4595 = vmatpush3.bf16.msra.mxu0 %v4966_v11  ;;  %4582 = vmatprep.mubr.msk.bf16.mxu0 %vm2084_vm12, %v5920_v43 }
 0x328   : > { %4596 = vmatprep.subr.bf16.mxu0 %v4967_v40  ;;  %4621 = vmatpush3.bf16.msra.mxu1 %v4971_v36 }
 0x329   : > { %4622 = vmatprep.subr.bf16.mxu1 %v5045_v13 }
 0x32b   : > { %4597 = vmatpush3.bf16.msra.mxu0 %v4967_v40 }
 0x32c   : > { %4917 = vmatprep.subr.msk.bf16.mxu0 %vm2109_vm2, %v4968_v38  ;;  %4623 = vmatpush3.bf16.msra.mxu1 %v3072_v45 }
 0x32d   : > { %4652 = vmatprep.subr.bf16.mxu1 %v5045_v13 }
 0x32e   : > { %4583 = vmatmul.mubr.msk.bf16.gmra.mrb[36].mxu0 %vm2084_vm12, %v5928_v34 }
 0x32f   : > { %4586 = vmatprep.mubr.msk.bf16.mxu0 %vm2084_vm12, %v5944_v4  ;;  %4599 = vmatpush3.bf16.msra.mxu0 %v2758_v47 }
 0x330   : > { %4688 = vmatprep.subr.bf16.mxu0 %v5045_v13 }
 0x336   : > { %4587 = vmatmul.mubr.msk.bf16.gmra.mrb[40].mxu0 %vm2084_vm12, %v2540_v30 }
 0x337   : > { %4590 = vmatprep.mubr.msk.bf16.mxu0 %vm2084_vm12, %v2542_v53 }
 0x33e   : > { %4591 = vmatmul.mubr.msk.bf16.gmra.mrb[56].mxu0 %vm2084_vm12, %v2541_v22 }
 0x33f   : > { %4600 = vmatprep.mubr.msk.bf16.mxu0 %vm2084_vm12, %v5933_v29 }
 0x346   : > { %4601 = vmatmul.mubr.msk.bf16.vlgmr.msra.gmra.mrb[32].mxu0 %vm2084_vm12, %v5936_v9 }
 0x347   : > { %4604 = vmatprep.mubr.msk.bf16.mxu0 %vm2084_vm12, %v5960_v17  ;;  %4689 = vmatpush3.bf16.msra.mxu0 %v4972_v33 }
 0x348   : > { %4690 = vmatprep.subr.bf16.mxu0 %v5045_v13 }
 0x34b   : > { %4691 = vmatpush3.bf16.msra.mxu0 %v4973_v58 }
 0x34c   : > { %4692 = vmatprep.subr.bf16.mxu0 %v5045_v13 }
 0x34e   : > { %4605 = vmatmul.mubr.msk.bf16.gmra.mrb[36].mxu0 %vm2084_vm12, %v2711_v41 }
 0x34f   : > { %4608 = vmatprep.mubr.msk.bf16.mxu0 %vm2084_vm12, %v2713_v24  ;;  %4693 = vmatpush3.bf16.msra.mxu0 %v4975_v18 }
 0x350   : > { %4694 = vmatprep.subr.bf16.mxu0 %v5045_v13 }
 0x353   : > { %4695 = vmatpush3.bf16.msra.mxu0 %v3369_v46 }
 0x354   : > { %4762 = vmatprep.subr.bf16.mxu0 %v5045_v13 }
 0x356   : > { %4609 = vmatmul.mubr.msk.bf16.gmra.mrb[40].mxu0 %vm2084_vm12, %v2715_v50 }
 0x357   : > { %4612 = vmatprep.mubr.msk.bf16.mxu0 %vm2084_vm12, %v2717_v52 }
 0x35e   : > { %4613 = vmatmul.mubr.msk.bf16.gmra.mrb[60].mxu0 %vm2084_vm12, %v2716_v48 }
 0x35f   : > { %4696 = vmatprep.mubr.msk.bf16.mxu0 %vm5046_vm0, %v5045_v13 }
 0x3b1   : > { %v4526_v25 = vpop.f32.mrb[44].mxu0 }
 0x3b2   : > { %v2195_v44 = vpop.f32.mrb[45].mxu0 }
 0x3b3   : > { %v4527_v35 = vpop.f32.mrb[46].mxu0 }
 0x3b4   : > { %v2198_v56 = vpop.f32.mrb[47].mxu0 }
 0x3d1   : > { %v4548_v60 = vpop.f32.mrb[48].mxu0 }
 0x3d2   : > { %v2342_v43 = vadd.f32 %v4548_v60, %v4526_v25  ;;  %v2333_v62 = vpop.f32.mrb[49].mxu0 }
 0x3d3   : > { %v2334_v49 = vadd.f32 %v2333_v62, %v2195_v44  ;;  %v4549_v28 = vpop.f32.mrb[50].mxu0 }
 0x3d4   : > { %v2336_v2 = vpop.f32.mrb[51].mxu0 }
 0x3d5   : > { %v2337_v3 = vadd.f32 %v2336_v2, %v2198_v56 }
 0x3f1   : > { %v4570_v15 = vpop.f32.mrb[52].mxu0 }
 0x3f2   : > { %v2520_v63 = vadd.f32 %v4570_v15, %v2342_v43  ;;  %v2492_v34 = vpop.f32.mrb[53].mxu0 }
 0x3f3   : > { %v2518_v54 = vadd.f32 %v2492_v34, %v2334_v49  ;;  %v4571_v29 = vpop.f32.mrb[54].mxu0 }
 0x3f4   : > { %v2495_v9 = vpop.f32.mrb[55].mxu0 }
 0x3f5   : > { %v2519_v20 = vadd.f32 %v2495_v9, %v2337_v3 }
 0x411   : > { %v4592_v55 = vpop.f32.mrb[56].mxu0 }
 0x412   : > { %v6094_v31 = vadd.f32 %v4592_v55, %v2520_v63  ;;  %v2667_v51 = vpop.f32.mrb[57].mxu0 }
 0x413   : > { %v6096_v7 = vadd.f32 %v2667_v51, %v2518_v54  ;;  %v4593_v12 = vpop.f32.mrb[58].mxu0 }
 0x414   : > { %v2670_v4 = vpop.f32.mrb[59].mxu0 }
 0x415   : > { %v6098_v5 = vadd.f32 %v2670_v4, %v2519_v20 }
 0x419   : > { %v4602_v23 = vpop.f32.mrb[32].mxu0 }
 0x41a   : > { %v2878_v22 = vadd.f32 %v4602_v23, %v6103_v14  ;;  %v2794_v0 = vpop.f32.mrb[33].mxu0 }
 0x41b   : > { %v2876_v19 = vadd.f32 %v6103_v14, %v2794_v0  ;;  %v4603_v10 = vpop.f32.mrb[34].mxu0 }
 0x41c   : > { %v2893_v30 = vmax.f32 %v2878_v22, 0.0  ;;  %v2879_v37 = vadd.f32 %v4603_v10, %v6103_v14  ;;  %v2797_v53 = vpop.f32.mrb[35].mxu0 }
 0x41d   : > { %v2891_v17 = vmax.f32 %v2876_v19, 0.0  ;;  %v2877_v39 = vadd.f32 %v6103_v14, %v2797_v53  ;;  %v4977_v19 = vld [vmem:[%s6471_s4] sm:$0xff]  }
 0x41e   : > { %v2894_v26 = vmax.f32 %v2879_v37, 0.0  ;;  %v2925_v48 = vrot.slane %v2893_v30, 2 }
 0x41f   : > { %v2892_v41 = vmax.f32 %v2877_v39, 0.0  ;;  %v2922_v50 = vrot.slane %v2891_v17, 2 }
 0x420   : > { %v2927_v24 = vrot.slane %v2894_v26, 2 }
 0x421   : > { %v2923_v52 = vrot.slane %v2892_v41, 2  ;;  %v4606_v57 = vpop.f32.mrb[36].mxu0 }
 0x422   : > { %v2928_v32 = vsel %vm1745_vm11, %v2925_v48, %v2927_v24  ;;  %v2882_v21 = vadd.f32 %v4606_v57, %v6103_v14  ;;  %v2810_v1 = vpop.f32.mrb[37].mxu0 }
 0x423   : > { %v2968_v6 = vmax.f32 %v2893_v30, %v2928_v32  ;;  %v2924_v42 = vsel %vm1745_vm11, %v2922_v50, %v2923_v52  ;;  %v2926_v61 = vsel %vm1745_vm11, %v2923_v52, %v2925_v48  ;;  %v2880_v11 = vadd.f32 %v6103_v14, %v2810_v1  ;;  %v4607_v40 = vpop.f32.mrb[38].mxu0 }
 0x424   : > { %v2966_v38 = vmax.f32 %v2891_v17, %v2924_v42  ;;  %v2967_v47 = vmax.f32 %v2892_v41, %v2926_v61  ;;  %v2897_v16 = vmax.f32 %v2882_v21, 0.0  ;;  %v2883_v27 = vadd.f32 %v4607_v40, %v6103_v14  ;;  %v2813_v36 = vpop.f32.mrb[39].mxu0 }
 0x425   : > { %v2895_v33 = vmax.f32 %v2880_v11, 0.0  ;;  %v2881_v58 = vadd.f32 %v6103_v14, %v2813_v36 }
 0x426   : > { %v6116_v8 = vpack.c.bf16 %v2967_v47, %v2966_v38  ;;  %v2898_v45 = vmax.f32 %v2883_v27, 0.0  ;;  %v2933_v35 = vrot.slane %v2897_v16, 2 }
 0x427   : > { %v2929_v25 = vrot.slane %v2895_v33, 2  ;;  %v2896_v44 = vmax.f32 %v2881_v58, 0.0 }
 0x428   : > { %v2935_v56 = vrot.slane %v2898_v45, 2  ;;  %v3013_v34 = vrot.slane %v6116_v8, 2  ;;  %v3309_v23 = vrot.slane %v6116_v8, 4 }
 0x429   : > { %v2930_v18 = vsel %vm1745_vm11, %v2927_v24, %v2929_v25  ;;  %v2931_v59 = vrot.slane %v2896_v44, 2  ;;  %v4610_v46 = vpop.f32.mrb[40].mxu0 }
 0x42a   : > { %v2969_v60 = vmax.f32 %v2894_v26, %v2930_v18  ;;  %v2936_v43 = vsel %vm1745_vm11, %v2933_v35, %v2935_v56  ;;  %v2886_v62 = vadd.f32 %v4610_v46, %v6103_v14  ;;  %v2826_v49 = vpop.f32.mrb[41].mxu0 }
 0x42b   : > { %v2972_v28 = vmax.f32 %v2897_v16, %v2936_v43  ;;  %v2932_v2 = vsel %vm1745_vm11, %v2929_v25, %v2931_v59  ;;  %v2934_v3 = vsel %vm1745_vm11, %v2931_v59, %v2933_v35  ;;  %v2884_v15 = vadd.f32 %v6103_v14, %v2826_v49  ;;  %v4611_v63 = vpop.f32.mrb[42].mxu0 }
 0x42c   : > { %v6125_v54 = vpack.c.bf16 %v2969_v60, %v2968_v6  ;;  %v2970_v29 = vmax.f32 %v2895_v33, %v2932_v2  ;;  %v2971_v9 = vmax.f32 %v2896_v44, %v2934_v3  ;;  %v2829_v20 = vpop.f32.mrb[43].mxu0  ;;  %v2901_v55 = vmax.f32 %v2886_v62, 0.0  ;;  %v4978_v6 = vld [vmem:[%s6471_s4 + $0x8] sm:$0xff]  }
 0x42d   : > { %v2899_v51 = vmax.f32 %v2884_v15, 0.0  ;;  %v6128_v12 = vadd.f32 %v4611_v63, %v6103_v14  ;;  %v2885_v4 = vadd.f32 %v6103_v14, %v2829_v20 }
 0x42e   : > { %v6132_v22 = vpack.c.bf16 %v2971_v9, %v2970_v29  ;;  %v3014_v0 = vrot.slane %v6125_v54, 2  ;;  %v3310_v10 = vrot.slane %v6125_v54, 4  ;;  %v2941_v26 = vrot.slane %v2901_v55, 2 }
 0x42f   : > { %v2937_v30 = vrot.slane %v2899_v51, 2  ;;  %v2902_v37 = vmax.f32 %v6128_v12, 0.0  ;;  %v2900_v53 = vmax.f32 %v2885_v4, 0.0 }
 0x430   : > { %v3015_v17 = vsel %vm1745_vm11, %v3013_v34, %v3014_v0  ;;  %v3311_v39 = vsel %vm2109_vm2, %v3309_v23, %v3310_v10  ;;  %v3016_v21 = vrot.slane %v6132_v22, 2  ;;  %v3312_v1 = vrot.slane %v6132_v22, 4 }
 0x431   : > { %v2938_v41 = vsel %vm1745_vm11, %v2935_v56, %v2937_v30  ;;  %v2943_v48 = vrot.slane %v2902_v37, 2  ;;  %v2939_v24 = vrot.slane %v2900_v53, 2  ;;  %v4614_v50 = vpop.f32.mrb[60].mxu0  ;;  %4625 = vmatmul.mubr.msk.bf16.vlgmr.msra.gmra.mrb[16].mxu1 %vm3049_vm13, %v3015_v17  ;;  %4697 = vmatmul.mubr.msk.bf16.vlgmr.msra.gmra.mrb[64].mxu0 %vm3049_vm13, %v3311_v39  ;;  %v4979_v56 = vld [vmem:[%s6471_s4 + $0x10] sm:$0xff]  }
 0x432   : > { %v2973_v52 = vmax.f32 %v2898_v45, %v2938_v41  ;;  %v2870_v57 = vadd.f32 %v4614_v50, %v6094_v31  ;;  %4653 = vmatpush3.bf16.msra.mxu1 %v4977_v19  ;;  %v2842_v32 = vpop.f32.mrb[61].mxu0  ;;  %4628 = vmatprep.mubr.msk.bf16.mxu1 %vm5046_vm0, %v5045_v13  ;;  %v3017_v18 = vsel %vm1745_vm11, %v3014_v0, %v3016_v21 }
 0x433   : > { %v2944_v42 = vsel %vm1745_vm11, %v2941_v26, %v2943_v48  ;;  %v2940_v61 = vsel %vm1745_vm11, %v2937_v30, %v2939_v24  ;;  %v2942_v11 = vsel %vm1745_vm11, %v2939_v24, %v2941_v26  ;;  %v2868_v31 = vadd.f32 %v2842_v32, %v6096_v7  ;;  %v4615_v40 = vpop.f32.mrb[62].mxu0  ;;  %4700 = vmatprep.mubr.msk.bf16.mxu0 %vm5046_vm0, %v5045_v13  ;;  %v4986_v32 = vld [vmem:[%s6473_s6] sm:$0xff]  }
 0x434   : > { %v6159_v38 = vpack.c.bf16 %v2973_v52, %v2972_v28  ;;  %v2976_v47 = vmax.f32 %v2901_v55, %v2944_v42  ;;  %v2974_v16 = vmax.f32 %v2899_v51, %v2940_v61  ;;  %v2975_v27 = vmax.f32 %v2900_v53, %v2942_v11  ;;  %v2845_v36 = vpop.f32.mrb[63].mxu0  ;;  %4654 = vmatprep.subr.bf16.mxu1 %v5045_v13  ;;  %v4984_v52 = vld [vmem:[%s6472_s5 + $0x18] sm:$0xff]  }
 0x435   : > { %v2890_v33 = vadd.f32 %v6103_v14, %v2870_v57  ;;  %v2888_v58 = vadd.f32 %v6103_v14, %v2868_v31  ;;  %v2869_v45 = vadd.f32 %v2845_v36, %v6098_v5  ;;  %v3313_v59 = vsel %vm2109_vm2, %v3310_v10, %v3312_v1  ;;  %v4980_v5 = vld [vmem:[%s6471_s4 + $0x18] sm:$0x3f]   ;;  %v4985_v57 = vld [vmem:[%s6472_s5 + $0x20] sm:$0xff]   ;;  %4763 = vmatpush3.bf16.msra.mxu0 %v4986_v32 }
 0x436   : > { %v6165_v25 = vpack.c.bf16 %v2975_v27, %v2974_v16  ;;  %4655 = vmatpush3.bf16.msra.mxu1 %v4978_v6  ;;  %v3018_v28 = vrot.slane %v6159_v38, 2  ;;  %v3314_v2 = vrot.slane %v6159_v38, 4  ;;  %v3208_v3 = vsel %vm1745_vm11, %v4980_v5, 0  ;;  %4764 = vmatprep.subr.bf16.mxu0 %v5045_v13  ;;  %v6338_v32 = vld [vmem:[%s6474_s7 + $0x3] ss:$0 sm:$0xff] }
 0x437   : > { %v2905_v7 = vmax.f32 %v2890_v33, 0.0  ;;  %v2903_v44 = vmax.f32 %v2888_v58, 0.0  ;;  %v2889_v35 = vadd.f32 %v6103_v14, %v2869_v45  ;;  %4656 = vmatprep.subr.bf16.mxu1 %v5045_v13 }
 0x438   : > { %v3019_v55 = vsel %vm1745_vm11, %v3016_v21, %v3018_v28  ;;  %v3315_v51 = vsel %vm2109_vm2, %v3312_v1, %v3314_v2  ;;  %v3020_v12 = vrot.slane %v6165_v25, 2  ;;  %v3316_v4 = vrot.slane %v6165_v25, 4  ;;  %v4987_v21 = vld [vmem:[%s6473_s6 + $0x8] sm:$0xff]   ;;  %v4988_v1 = vld [vmem:[%s6473_s6 + $0x10] ss:$0 sps:$4 sm:$0xff]  }
 0x439   : > { %v2945_v46 = vrot.slane %v2903_v44, 2  ;;  %v2904_v60 = vmax.f32 %v2889_v35, 0.0  ;;  %4629 = vmatmul.mubr.msk.bf16.gmra.mrb[20].mxu1 %vm3049_vm13, %v3017_v18  ;;  %4701 = vmatmul.mubr.msk.bf16.gmra.mrb[68].mxu0 %vm3049_vm13, %v3313_v59  ;;  %v2949_v14 = vrot.slane %v2905_v7, 2  ;;  %v3738_v6 = vsel %vm2109_vm2, %v4988_v1, 0 }
 0x43a   : > { %4632 = vmatprep.mubr.msk.bf16.mxu1 %vm5046_vm0, %v5045_v13  ;;  %4704 = vmatprep.mubr.msk.bf16.mxu0 %vm5046_vm0, %v5045_v13  ;;  %v3021_v23 = vsel %vm1745_vm11, %v3018_v28, %v3020_v12  ;;  %v3317_v0 = vsel %vm2109_vm2, %v3314_v2, %v3316_v4 }
 0x43b   : > { %v2946_v43 = vsel %vm1745_vm11, %v2943_v48, %v2945_v46  ;;  %v2947_v62 = vrot.slane %v2904_v60, 2  ;;  %4657 = vmatpush3.bf16.msra.mxu1 %v4979_v56  ;;  %v2980_v39 = vmax.f32 %v2905_v7, %v2949_v14  ;;  %4765 = vmatpush3.bf16.msra.mxu0 %v4987_v21 }
 0x43c   : > { %v2977_v49 = vmax.f32 %v2902_v37, %v2946_v43  ;;  %4658 = vmatprep.subr.bf16.mxu1 %v5045_v13  ;;  %4766 = vmatprep.subr.bf16.mxu0 %v5045_v13 }
 0x43d   : > { %v2948_v15 = vsel %vm1745_vm11, %v2945_v46, %v2947_v62  ;;  %v2950_v63 = vsel %vm1745_vm11, %v2947_v62, %v2949_v14  ;;  %v2988_v48 = vpack.c.bf16 %v2980_v39, %v2980_v39 }
 0x43e   : > { %v2978_v34 = vmax.f32 %v2903_v44, %v2948_v15  ;;  %v2979_v29 = vmax.f32 %v2904_v60, %v2950_v63  ;;  %v2986_v9 = vpack.c.bf16 %v2977_v49, %v2976_v47 }
 0x43f   : > { %4659 = vmatpush3.bf16.msra.mxu1 %v3208_v3  ;;  %v3322_v24 = vrot.slane %v2988_v48, 4  ;;  %4767 = vmatpush3.bf16.msra.mxu0 %v3738_v6 }
 0x440   : > { %v2987_v20 = vpack.c.bf16 %v2979_v29, %v2978_v34  ;;  %4724 = vmatprep.subr.bf16.mxu1 %v5045_v13  ;;  %v3022_v19 = vrot.slane %v2986_v9, 2  ;;  %v3318_v10 = vrot.slane %v2986_v9, 4 }
 0x441   : > { %4633 = vmatmul.mubr.msk.bf16.gmra.mrb[24].mxu1 %vm3049_vm13, %v3019_v55  ;;  %4705 = vmatmul.mubr.msk.bf16.gmra.mrb[72].mxu0 %vm3049_vm13, %v3315_v51 }
 0x442   : > { %4636 = vmatprep.mubr.msk.bf16.mxu1 %vm5046_vm0, %v5045_v13  ;;  %4708 = vmatprep.mubr.msk.bf16.mxu0 %vm5046_vm0, %v5045_v13  ;;  %v3023_v30 = vsel %vm1745_vm11, %v3020_v12, %v3022_v19  ;;  %v3319_v37 = vsel %vm2109_vm2, %v3316_v4, %v3318_v10  ;;  %v3024_v53 = vrot.slane %v2987_v20, 2  ;;  %v3320_v17 = vrot.slane %v2987_v20, 4 }
 0x444   : > { %v3025_v26 = vsel %vm1745_vm11, %v3022_v19, %v3024_v53  ;;  %v3321_v41 = vsel %vm2109_vm2, %v3318_v10, %v3320_v17  ;;  %v3323_v50 = vsel %vm2109_vm2, %v3320_v17, %v3322_v24 }
 0x449   : > { %4637 = vmatmul.mubr.msk.bf16.gmra.mrb[28].mxu1 %vm3049_vm13, %v3021_v23  ;;  %4709 = vmatmul.mubr.msk.bf16.gmra.mrb[76].mxu0 %vm3049_vm13, %v3317_v0 }
 0x44a   : > { %4640 = vmatprep.mubr.msk.bf16.mxu1 %vm5046_vm0, %v5045_v13  ;;  %4712 = vmatprep.mubr.msk.bf16.mxu0 %vm5046_vm0, %v5045_v13 }
 0x451   : > { %4641 = vmatmul.mubr.msk.bf16.gmra.mrb[32].mxu1 %vm3049_vm13, %v3023_v30  ;;  %4713 = vmatmul.mubr.msk.bf16.gmra.mrb[80].mxu0 %vm3049_vm13, %v3319_v37 }
 0x452   : > { %4644 = vmatprep.mubr.msk.bf16.mxu1 %vm5046_vm0, %v5045_v13  ;;  %4716 = vmatprep.mubr.msk.bf16.mxu0 %vm5046_vm0, %v5045_v13 }
 0x459   : > { %4645 = vmatmul.mubr.msk.bf16.gmra.mrb[36].mxu1 %vm3049_vm13, %v3025_v26  ;;  %4717 = vmatmul.mubr.msk.bf16.gmra.mrb[84].mxu0 %vm3049_vm13, %v3321_v41 }
 0x45a   : > { %4648 = vmatprep.mubr.msk.bf16.mxu1 %vm5046_vm0, %v5045_v13  ;;  %4720 = vmatprep.mubr.msk.bf16.mxu0 %vm5046_vm0, %v5045_v13 }
 0x461   : > { %4649 = vmatmul.mubr.msk.bf16.gmra.mrb[40].mxu1 %vm3049_vm13, %v3024_v53  ;;  %4721 = vmatmul.mubr.msk.bf16.gmra.mrb[88].mxu0 %vm3049_vm13, %v3323_v50 }
 0x462   : > { %4660 = vmatprep.mubr.msk.bf16.mxu1 %vm5046_vm0, %v5045_v13  ;;  %4768 = vmatprep.mubr.msk.bf16.mxu0 %vm5046_vm0, %v5045_v13 }
 0x469   : > { %4661 = vmatmul.mubr.msk.bf16.vlgmr.msra.gmra.mrb[44].mxu1 %vm3049_vm13, %v6116_v8  ;;  %v4981_v8 = vld [vmem:[%s6472_s5] sm:$0xff]  }
 0x46a   : > { %4664 = vmatprep.mubr.msk.bf16.mxu1 %vm5046_vm0, %v5045_v13  ;;  %4725 = vmatpush3.bf16.msra.mxu1 %v4981_v8 }
 0x46b   : > { %4726 = vmatprep.subr.bf16.mxu1 %v5045_v13 }
 0x471   : > { %4665 = vmatmul.mubr.msk.bf16.gmra.mrb[48].mxu1 %vm3049_vm13, %v6125_v54  ;;  %v4982_v54 = vld [vmem:[%s6472_s5 + $0x8] sm:$0xff]  }
 0x472   : > { %4668 = vmatprep.mubr.msk.bf16.mxu1 %vm5046_vm0, %v5045_v13  ;;  %4727 = vmatpush3.bf16.msra.mxu1 %v4982_v54 }
 0x473   : > { %4728 = vmatprep.subr.bf16.mxu1 %v5045_v13 }
 0x479   : > { %4669 = vmatmul.mubr.msk.bf16.gmra.mrb[52].mxu1 %vm3049_vm13, %v6132_v22  ;;  %v4983_v22 = vld [vmem:[%s6472_s5 + $0x10] sm:$0xff]  }
 0x47a   : > { %4672 = vmatprep.mubr.msk.bf16.mxu1 %vm5046_vm0, %v5045_v13  ;;  %4729 = vmatpush3.bf16.msra.mxu1 %v4983_v22 }
 0x47b   : > { %4730 = vmatprep.subr.bf16.mxu1 %v5045_v13 }
 0x47e   : > { %4731 = vmatpush3.bf16.msra.mxu1 %v4984_v52 }
 0x47f   : > { %4732 = vmatprep.subr.bf16.mxu1 %v5045_v13 }
 0x481   : > { %4673 = vmatmul.mubr.msk.bf16.gmra.mrb[56].mxu1 %vm3049_vm13, %v6159_v38 }
 0x482   : > { %4676 = vmatprep.mubr.msk.bf16.mxu1 %vm5046_vm0, %v5045_v13  ;;  %4733 = vmatpush3.bf16.msra.mxu1 %v4985_v57 }
 0x489   : > { %4677 = vmatmul.mubr.msk.bf16.gmra.mrb[60].mxu1 %vm3049_vm13, %v6165_v25 }
 0x48a   : > { %4680 = vmatprep.mubr.msk.bf16.mxu1 %vm5046_vm0, %v5045_v13 }
 0x491   : > { %4681 = vmatmul.mubr.msk.bf16.gmra.mrb[64].mxu1 %vm3049_vm13, %v2986_v9 }
 0x492   : > { %4684 = vmatprep.mubr.msk.bf16.mxu1 %vm5046_vm0, %v5045_v13 }
 0x499   : > { %4685 = vmatmul.mubr.msk.bf16.gmra.mrb[68].mxu1 %vm3049_vm13, %v2987_v20 }
 0x49a   : > { %4734 = vmatprep.mubr.msk.bf16.mxu1 %vm5046_vm0, %v5045_v13 }
 0x504   : > { %v3108_v42 = vpop.f32.mrb[16].mxu1  ;;  %v3405_v61 = vpop.f32.mrb[64].mxu0 }
 0x505   : > { %v4626_v11 = vpop.f32.mrb[17].mxu1  ;;  %v4698_v31 = vpop.f32.mrb[65].mxu0 }
 0x506   : > { %v3111_v40 = vpop.f32.mrb[18].mxu1  ;;  %v3408_v38 = vpop.f32.mrb[66].mxu0 }
 0x507   : > { %v4627_v47 = vpop.f32.mrb[19].mxu1  ;;  %v4699_v16 = vpop.f32.mrb[67].mxu0 }
 0x50c   : > { %v3116_v27 = vpop.f32.mrb[20].mxu1  ;;  %v6289_v36 = vpop.f32.mrb[68].mxu0 }
 0x50d   : > { %v4630_v33 = vpop.f32.mrb[21].mxu1  ;;  %v4702_v58 = vpop.f32.mrb[69].mxu0 }
 0x50e   : > { %v6291_v45 = vpop.f32.mrb[22].mxu1  ;;  %v6293_v25 = vpop.f32.mrb[70].mxu0 }
 0x50f   : > { %v4631_v7 = vpop.f32.mrb[23].mxu1  ;;  %v4703_v44 = vpop.f32.mrb[71].mxu0 }
 0x514   : > { %v6295_v35 = vpop.f32.mrb[24].mxu1  ;;  %v6297_v56 = vpop.f32.mrb[72].mxu0 }
 0x515   : > { %v4634_v18 = vpop.f32.mrb[25].mxu1  ;;  %v4706_v59 = vpop.f32.mrb[73].mxu0 }
 0x516   : > { %v6299_v5 = vpop.f32.mrb[26].mxu1  ;;  %v6301_v46 = vpop.f32.mrb[74].mxu0 }
 0x517   : > { %v4635_v60 = vpop.f32.mrb[27].mxu1  ;;  %v4707_v14 = vpop.f32.mrb[75].mxu0 }
 0x51c   : > { %v6303_v43 = vpop.f32.mrb[28].mxu1  ;;  %v6305_v62 = vpop.f32.mrb[76].mxu0 }
 0x51d   : > { %v4638_v49 = vpop.f32.mrb[29].mxu1  ;;  %v4710_v28 = vpop.f32.mrb[77].mxu0 }
 0x51e   : > { %v6307_v2 = vpop.f32.mrb[30].mxu1  ;;  %v6309_v3 = vpop.f32.mrb[78].mxu0 }
 0x51f   : > { %v4639_v15 = vpop.f32.mrb[31].mxu1  ;;  %v4711_v63 = vpop.f32.mrb[79].mxu0 }
 0x524   : > { %v6311_v34 = vpop.f32.mrb[32].mxu1  ;;  %v6313_v29 = vpop.f32.mrb[80].mxu0 }
 0x525   : > { %v4642_v9 = vpop.f32.mrb[33].mxu1  ;;  %v4714_v20 = vpop.f32.mrb[81].mxu0 }
 0x526   : > { %v6315_v55 = vpop.f32.mrb[34].mxu1  ;;  %v6317_v51 = vpop.f32.mrb[82].mxu0 }
 0x527   : > { %v4643_v12 = vpop.f32.mrb[35].mxu1  ;;  %v4715_v4 = vpop.f32.mrb[83].mxu0 }
 0x52c   : > { %v6319_v23 = vpop.f32.mrb[36].mxu1  ;;  %v6321_v0 = vpop.f32.mrb[84].mxu0 }
 0x52d   : > { %v4646_v19 = vpop.f32.mrb[37].mxu1  ;;  %v4718_v10 = vpop.f32.mrb[85].mxu0 }
 0x52e   : > { %v6323_v30 = vpop.f32.mrb[38].mxu1  ;;  %v6325_v37 = vpop.f32.mrb[86].mxu0 }
 0x52f   : > { %v4647_v53 = vpop.f32.mrb[39].mxu1  ;;  %v4719_v17 = vpop.f32.mrb[87].mxu0 }
 0x534   : > { %v6327_v39 = vpop.f32.mrb[40].mxu1  ;;  %v6329_v26 = vpop.f32.mrb[88].mxu0 }
 0x535   : > { %v4650_v41 = vpop.f32.mrb[41].mxu1  ;;  %v4722_v48 = vpop.f32.mrb[89].mxu0 }
 0x536   : > { %v6331_v24 = vpop.f32.mrb[42].mxu1  ;;  %v6333_v50 = vpop.f32.mrb[90].mxu0 }
 0x537   : > { %v4651_v8 = vpop.f32.mrb[43].mxu1  ;;  %v4723_v54 = vpop.f32.mrb[91].mxu0 }
 0x53c   : > { %v3244_v22 = vpop.f32.mrb[44].mxu1 }
 0x53d   : > { %v3245_v52 = vadd.f32 %v3244_v22, %v3108_v42  ;;  %v4662_v57 = vpop.f32.mrb[45].mxu1 }
 0x53e   : > { %v3247_v21 = vpop.f32.mrb[46].mxu1 }
 0x53f   : > { %v3460_v1 = vadd.f32 %v3405_v61, %v3245_v52  ;;  %v3248_v6 = vadd.f32 %v3247_v21, %v3111_v40  ;;  %v4663_v11 = vpop.f32.mrb[47].mxu1 }
 0x541   : > { %v3479_v31 = vadd.f32 %v6338_v32, %v3460_v1  ;;  %v3461_v47 = vadd.f32 %v3408_v38, %v3248_v6 }
 0x543   : > { %v3480_v16 = vadd.f32 %v6338_v32, %v3461_v47  ;;  %v3493_v58 = vmax.f32 %v3479_v31, 0.0 }
 0x544   : > { %v3252_v33 = vpop.f32.mrb[48].mxu1 }
 0x545   : > { %v3494_v7 = vmax.f32 %v3480_v16, 0.0  ;;  %v3253_v44 = vadd.f32 %v3252_v33, %v3116_v27  ;;  %v4666_v42 = vpop.f32.mrb[49].mxu1 }
 0x546   : > { %v3255_v18 = vpop.f32.mrb[50].mxu1 }
 0x547   : > { %v3507_v59 = vpack.c.bf16 %v3494_v7, %v3493_v58  ;;  %v3462_v60 = vadd.f32 %v6289_v36, %v3253_v44  ;;  %v3256_v14 = vadd.f32 %v3255_v18, %v6291_v45  ;;  %v4667_v61 = vpop.f32.mrb[51].mxu1 }
 0x549   : > { %v3481_v40 = vadd.f32 %v6338_v32, %v3462_v60  ;;  %v3463_v49 = vadd.f32 %v6293_v25, %v3256_v14  ;;  %4735 = vmatmul.mubr.msk.bf16.vlgmr.msra.gmra.mrb[72].mxu1 %vm3559_vm14, %v3507_v59 }
 0x54a   : > { %4738 = vmatprep.mubr.msk.bf16.mxu1 %vm5046_vm0, %v5045_v13 }
 0x54b   : > { %v3482_v38 = vadd.f32 %v6338_v32, %v3463_v49  ;;  %v3495_v28 = vmax.f32 %v3481_v40, 0.0 }
 0x54c   : > { %v3260_v27 = vpop.f32.mrb[52].mxu1 }
 0x54d   : > { %v3496_v15 = vmax.f32 %v3482_v38, 0.0  ;;  %v3261_v63 = vadd.f32 %v3260_v27, %v6295_v35  ;;  %v4670_v36 = vpop.f32.mrb[53].mxu1 }
 0x54e   : > { %v3263_v9 = vpop.f32.mrb[54].mxu1 }
 0x54f   : > { %v3508_v45 = vpack.c.bf16 %v3496_v15, %v3495_v28  ;;  %v3464_v20 = vadd.f32 %v6297_v56, %v3261_v63  ;;  %v3264_v12 = vadd.f32 %v3263_v9, %v6299_v5  ;;  %v4671_v25 = vpop.f32.mrb[55].mxu1 }
 0x551   : > { %v3483_v4 = vadd.f32 %v6338_v32, %v3464_v20  ;;  %v3465_v19 = vadd.f32 %v6301_v46, %v3264_v12  ;;  %4739 = vmatmul.mubr.msk.bf16.gmra.mrb[76].mxu1 %vm3559_vm14, %v3508_v45 }
 0x552   : > { %4742 = vmatprep.mubr.msk.bf16.mxu1 %vm5046_vm0, %v5045_v13 }
 0x553   : > { %v3484_v10 = vadd.f32 %v6338_v32, %v3465_v19  ;;  %v3497_v53 = vmax.f32 %v3483_v4, 0.0 }
 0x554   : > { %v3268_v35 = vpop.f32.mrb[56].mxu1 }
 0x555   : > { %v3498_v17 = vmax.f32 %v3484_v10, 0.0  ;;  %v3269_v41 = vadd.f32 %v3268_v35, %v6303_v43  ;;  %v4674_v56 = vpop.f32.mrb[57].mxu1 }
 0x556   : > { %v3271_v48 = vpop.f32.mrb[58].mxu1 }
 0x557   : > { %v3509_v5 = vpack.c.bf16 %v3498_v17, %v3497_v53  ;;  %v3466_v8 = vadd.f32 %v6305_v62, %v3269_v41  ;;  %v3272_v54 = vadd.f32 %v3271_v48, %v6307_v2  ;;  %v4675_v46 = vpop.f32.mrb[59].mxu1 }
 0x559   : > { %v3485_v22 = vadd.f32 %v6338_v32, %v3466_v8  ;;  %v3467_v52 = vadd.f32 %v6309_v3, %v3272_v54  ;;  %4743 = vmatmul.mubr.msk.bf16.gmra.mrb[80].mxu1 %vm3559_vm14, %v3509_v5 }
 0x55a   : > { %4746 = vmatprep.mubr.msk.bf16.mxu1 %vm5046_vm0, %v5045_v13 }
 0x55b   : > { %v3486_v57 = vadd.f32 %v6338_v32, %v3467_v52  ;;  %v3499_v21 = vmax.f32 %v3485_v22, 0.0 }
 0x55c   : > { %v3276_v43 = vpop.f32.mrb[60].mxu1 }
 0x55d   : > { %v3500_v1 = vmax.f32 %v3486_v57, 0.0  ;;  %v3277_v6 = vadd.f32 %v3276_v43, %v6311_v34  ;;  %v4678_v62 = vpop.f32.mrb[61].mxu1 }
 0x55e   : > { %v3279_v11 = vpop.f32.mrb[62].mxu1 }
 0x55f   : > { %v3510_v2 = vpack.c.bf16 %v3500_v1, %v3499_v21  ;;  %v3468_v31 = vadd.f32 %v6313_v29, %v3277_v6  ;;  %v3280_v47 = vadd.f32 %v3279_v11, %v6315_v55  ;;  %v4679_v3 = vpop.f32.mrb[63].mxu1 }
 0x561   : > { %v3487_v16 = vadd.f32 %v6338_v32, %v3468_v31  ;;  %v3469_v33 = vadd.f32 %v6317_v51, %v3280_v47  ;;  %4747 = vmatmul.mubr.msk.bf16.gmra.mrb[84].mxu1 %vm3559_vm14, %v3510_v2 }
 0x562   : > { %4750 = vmatprep.mubr.msk.bf16.mxu1 %vm5046_vm0, %v5045_v13 }
 0x563   : > { %v3488_v58 = vadd.f32 %v6338_v32, %v3469_v33  ;;  %v3501_v7 = vmax.f32 %v3487_v16, 0.0 }
 0x564   : > { %v3284_v34 = vpop.f32.mrb[64].mxu1 }
 0x565   : > { %v3502_v44 = vmax.f32 %v3488_v58, 0.0  ;;  %v3285_v42 = vadd.f32 %v3284_v34, %v6319_v23  ;;  %v4682_v29 = vpop.f32.mrb[65].mxu1 }
 0x566   : > { %v3287_v18 = vpop.f32.mrb[66].mxu1 }
 0x567   : > { %v3511_v55 = vpack.c.bf16 %v3502_v44, %v3501_v7  ;;  %v3470_v59 = vadd.f32 %v6321_v0, %v3285_v42  ;;  %v3288_v60 = vadd.f32 %v3287_v18, %v6323_v30  ;;  %v4683_v51 = vpop.f32.mrb[67].mxu1 }
 0x569   : > { %v3489_v14 = vadd.f32 %v6338_v32, %v3470_v59  ;;  %v3471_v61 = vadd.f32 %v6325_v37, %v3288_v60  ;;  %4751 = vmatmul.mubr.msk.bf16.gmra.mrb[88].mxu1 %vm3559_vm14, %v3511_v55 }
 0x56a   : > { %4754 = vmatprep.mubr.msk.bf16.mxu1 %vm5046_vm0, %v5045_v13 }
 0x56b   : > { %v3490_v40 = vadd.f32 %v6338_v32, %v3471_v61  ;;  %v3503_v49 = vmax.f32 %v3489_v14, 0.0 }
 0x56c   : > { %v3292_v23 = vpop.f32.mrb[68].mxu1 }
 0x56d   : > { %v3504_v38 = vmax.f32 %v3490_v40, 0.0  ;;  %v3293_v27 = vadd.f32 %v3292_v23, %v6327_v39  ;;  %v4686_v0 = vpop.f32.mrb[69].mxu1 }
 0x56e   : > { %v3295_v28 = vpop.f32.mrb[70].mxu1 }
 0x56f   : > { %v3512_v30 = vpack.c.bf16 %v3504_v38, %v3503_v49  ;;  %v3472_v15 = vadd.f32 %v6329_v26, %v3293_v27  ;;  %v3296_v63 = vadd.f32 %v3295_v28, %v6331_v24  ;;  %v4687_v37 = vpop.f32.mrb[71].mxu1  ;;  %v6399_v26 = vld [vmem:[%s6474_s7 + $0x4] ss:$0 sm:$0xff] }
 0x571   : > { %v3491_v36 = vadd.f32 %v6338_v32, %v3472_v15  ;;  %v3473_v9 = vadd.f32 %v6333_v50, %v3296_v63  ;;  %4755 = vmatmul.mubr.msk.bf16.gmra.mrb[92].mxu1 %vm3559_vm14, %v3512_v30 }
 0x572   : > { %4758 = vmatprep.mubr.msk.bf16.mxu1 %vm5046_vm0, %v5045_v13 }
 0x573   : > { %v3492_v45 = vadd.f32 %v6338_v32, %v3473_v9  ;;  %v3505_v39 = vmax.f32 %v3491_v36, 0.0 }
 0x575   : > { %v3506_v20 = vmax.f32 %v3492_v45, 0.0 }
 0x577   : > { %v3513_v12 = vpack.c.bf16 %v3506_v20, %v3505_v39 }
 0x579   : > { %4759 = vmatmul.mubr.msk.bf16.gmra.mrb[96].mxu1 %vm3559_vm14, %v3513_v12 }
 0x61c   : > { %v3615_v24 = vpop.f32.mrb[72].mxu1 }
 0x61d   : > { %v3616_v50 = vadd.f32 %v6399_v26, %v3615_v24  ;;  %v4736_v25 = vpop.f32.mrb[73].mxu1 }
 0x61e   : > { %v3618_v4 = vpop.f32.mrb[74].mxu1 }
 0x61f   : > { %v3619_v19 = vadd.f32 %v6399_v26, %v3618_v4  ;;  %v4737_v10 = vpop.f32.mrb[75].mxu1  ;;  %v3670_v35 = vmax.f32 %v3616_v50, 0.0  ;;  %v4149_v50 = vld [vmem:[%s6474_s7 + $0x5] ss:$0 sm:$0xff] }
 0x621   : > { %v3671_v32 = vmax.f32 %v3619_v19, 0.0 }
 0x623   : > { %v3684_v53 = vpack.c.bf16 %v3671_v32, %v3670_v35 }
 0x624   : > { %v3623_v17 = vpop.f32.mrb[76].mxu1 }
 0x625   : > { %v3624_v41 = vadd.f32 %v6399_v26, %v3623_v17  ;;  %v4740_v56 = vpop.f32.mrb[77].mxu1  ;;  %4769 = vmatmul.mubr.msk.bf16.vlgmr.msra.gmra.mrb[92].mxu0 %vm2084_vm12, %v3684_v53 }
 0x626   : > { %v3626_v48 = vpop.f32.mrb[78].mxu1  ;;  %4772 = vmatprep.mubr.msk.bf16.mxu0 %vm5046_vm0, %v5045_v13 }
 0x627   : > { %v3627_v5 = vadd.f32 %v6399_v26, %v3626_v48  ;;  %v4741_v8 = vpop.f32.mrb[79].mxu1  ;;  %v3672_v54 = vmax.f32 %v3624_v41, 0.0 }
 0x629   : > { %v3673_v46 = vmax.f32 %v3627_v5, 0.0 }
 0x62b   : > { %v3685_v22 = vpack.c.bf16 %v3673_v46, %v3672_v54 }
 0x62c   : > { %v3631_v52 = vpop.f32.mrb[80].mxu1 }
 0x62d   : > { %v3632_v57 = vadd.f32 %v6399_v26, %v3631_v52  ;;  %v4744_v43 = vpop.f32.mrb[81].mxu1  ;;  %4773 = vmatmul.mubr.msk.bf16.gmra.mrb[96].mxu0 %vm2084_vm12, %v3685_v22 }
 0x62e   : > { %v3634_v21 = vpop.f32.mrb[82].mxu1  ;;  %4776 = vmatprep.mubr.msk.bf16.mxu0 %vm5046_vm0, %v5045_v13 }
 0x62f   : > { %v3635_v1 = vadd.f32 %v6399_v26, %v3634_v21  ;;  %v4745_v6 = vpop.f32.mrb[83].mxu1  ;;  %v3674_v62 = vmax.f32 %v3632_v57, 0.0 }
 0x631   : > { %v3675_v11 = vmax.f32 %v3635_v1, 0.0 }
 0x633   : > { %v3686_v2 = vpack.c.bf16 %v3675_v11, %v3674_v62 }
 0x634   : > { %v3639_v31 = vpop.f32.mrb[84].mxu1 }
 0x635   : > { %v3640_v47 = vadd.f32 %v6399_v26, %v3639_v31  ;;  %v4748_v3 = vpop.f32.mrb[85].mxu1  ;;  %4777 = vmatmul.mubr.msk.bf16.gmra.mrb[100].mxu0 %vm2084_vm12, %v3686_v2 }
 0x636   : > { %v3642_v16 = vpop.f32.mrb[86].mxu1  ;;  %4780 = vmatprep.mubr.msk.bf16.mxu0 %vm5046_vm0, %v5045_v13 }
 0x637   : > { %v3643_v33 = vadd.f32 %v6399_v26, %v3642_v16  ;;  %v4749_v58 = vpop.f32.mrb[87].mxu1  ;;  %v3676_v34 = vmax.f32 %v3640_v47, 0.0 }
 0x639   : > { %v3677_v7 = vmax.f32 %v3643_v33, 0.0 }
 0x63b   : > { %v3687_v44 = vpack.c.bf16 %v3677_v7, %v3676_v34 }
 0x63c   : > { %v3647_v42 = vpop.f32.mrb[88].mxu1 }
 0x63d   : > { %v3648_v29 = vadd.f32 %v6399_v26, %v3647_v42  ;;  %v4752_v18 = vpop.f32.mrb[89].mxu1  ;;  %4781 = vmatmul.mubr.msk.bf16.gmra.mrb[104].mxu0 %vm2084_vm12, %v3687_v44 }
 0x63e   : > { %v3650_v55 = vpop.f32.mrb[90].mxu1  ;;  %4784 = vmatprep.mubr.msk.bf16.mxu0 %vm5046_vm0, %v5045_v13 }
 0x63f   : > { %v3651_v59 = vadd.f32 %v6399_v26, %v3650_v55  ;;  %v4753_v60 = vpop.f32.mrb[91].mxu1  ;;  %v3678_v51 = vmax.f32 %v3648_v29, 0.0 }
 0x641   : > { %v3679_v14 = vmax.f32 %v3651_v59, 0.0 }
 0x643   : > { %v3688_v61 = vpack.c.bf16 %v3679_v14, %v3678_v51 }
 0x644   : > { %v3655_v40 = vpop.f32.mrb[92].mxu1 }
 0x645   : > { %v3656_v23 = vadd.f32 %v6399_v26, %v3655_v40  ;;  %v4756_v49 = vpop.f32.mrb[93].mxu1  ;;  %4785 = vmatmul.mubr.msk.bf16.gmra.mrb[108].mxu0 %vm2084_vm12, %v3688_v61 }
 0x646   : > { %v3658_v38 = vpop.f32.mrb[94].mxu1  ;;  %4788 = vmatprep.mubr.msk.bf16.mxu0 %vm5046_vm0, %v5045_v13 }
 0x647   : > { %v3659_v27 = vadd.f32 %v6399_v26, %v3658_v38  ;;  %v4757_v0 = vpop.f32.mrb[95].mxu1  ;;  %v3680_v28 = vmax.f32 %v3656_v23, 0.0 }
 0x649   : > { %v3681_v30 = vmax.f32 %v3659_v27, 0.0 }
 0x64b   : > { %v3689_v15 = vpack.c.bf16 %v3681_v30, %v3680_v28 }
 0x64c   : > { %v3663_v63 = vpop.f32.mrb[96].mxu1 }
 0x64d   : > { %v3664_v37 = vadd.f32 %v6399_v26, %v3663_v63  ;;  %v4760_v36 = vpop.f32.mrb[97].mxu1  ;;  %4789 = vmatmul.mubr.msk.bf16.gmra.mrb[112].mxu0 %vm2084_vm12, %v3689_v15 }
 0x64e   : > { %v3666_v9 = vpop.f32.mrb[98].mxu1  ;;  %4792 = vmatprep.mubr.msk.bf16.mxu0 %vm5046_vm0, %v5045_v13 }
 0x64f   : > { %v3667_v45 = vadd.f32 %v6399_v26, %v3666_v9  ;;  %v4761_v39 = vpop.f32.mrb[99].mxu1  ;;  %v3682_v20 = vmax.f32 %v3664_v37, 0.0 }
 0x651   : > { %v3683_v12 = vmax.f32 %v3667_v45, 0.0 }
 0x653   : > { %v3690_v24 = vpack.c.bf16 %v3683_v12, %v3682_v20 }
 0x655   : > { %4793 = vmatmul.mubr.msk.bf16.gmra.mrb[116].mxu0 %vm2084_vm12, %v3690_v24 }
 0x6f8   : > { %v3774_v13 = vpop.f32.mrb[92].mxu0 }
 0x6f9   : > { %v3775_v26 = vadd.f32 %v4149_v50, %v3774_v13  ;;  %v4770_v25 = vpop.f32.mrb[93].mxu0 }
 0x6fa   : > { %v3777_v4 = vpop.f32.mrb[94].mxu0 }
 0x6fb   : > { %3828 = vst [vmem:[%s6442_s11] sm:$0xff] %v3775_v26  ;;  %v3778_v19 = vadd.f32 %v4149_v50, %v3777_v4  ;;  %v4771_v10 = vpop.f32.mrb[95].mxu0 }
 0x6fd   : > { %3829 = vst [vmem:[%s6442_s11 + $0x8] sm:$0xff] %v3778_v19 }
 0x700   : > { %v3782_v35 = vpop.f32.mrb[96].mxu0 }
 0x701   : > { %v3783_v32 = vadd.f32 %v4149_v50, %v3782_v35  ;;  %v4774_v53 = vpop.f32.mrb[97].mxu0 }
 0x702   : > { %v3785_v17 = vpop.f32.mrb[98].mxu0 }
 0x703   : > { %3830 = vst [vmem:[%s6442_s11 + $0x10] sm:$0xff] %v3783_v32  ;;  %v3786_v41 = vadd.f32 %v4149_v50, %v3785_v17  ;;  %v4775_v56 = vpop.f32.mrb[99].mxu0 }
 0x705   : > { %3831 = vst [vmem:[%s6442_s11 + $0x18] sm:$0xff] %v3786_v41 }
 0x708   : > { %v3790_v48 = vpop.f32.mrb[100].mxu0 }
 0x709   : > { %v3791_v5 = vadd.f32 %v4149_v50, %v3790_v48  ;;  %v4778_v8 = vpop.f32.mrb[101].mxu0 }
 0x70a   : > { %v3793_v54 = vpop.f32.mrb[102].mxu0 }
 0x70b   : > { %3832 = vst [vmem:[%s6442_s11 + $0x20] sm:$0xff] %v3791_v5  ;;  %v3794_v46 = vadd.f32 %v4149_v50, %v3793_v54  ;;  %v4779_v22 = vpop.f32.mrb[103].mxu0 }
 0x70d   : > { %3833 = vst [vmem:[%s6442_s11 + $0x28] sm:$0xff] %v3794_v46 }
 0x710   : > { %v3798_v52 = vpop.f32.mrb[104].mxu0 }
 0x711   : > { %v3799_v57 = vadd.f32 %v4149_v50, %v3798_v52  ;;  %v4782_v43 = vpop.f32.mrb[105].mxu0 }
 0x712   : > { %v3801_v21 = vpop.f32.mrb[106].mxu0 }
 0x713   : > { %3834 = vst [vmem:[%s6442_s11 + $0x30] sm:$0xff] %v3799_v57  ;;  %v3802_v1 = vadd.f32 %v4149_v50, %v3801_v21  ;;  %v4783_v6 = vpop.f32.mrb[107].mxu0 }
 0x715   : > { %3835 = vst [vmem:[%s6442_s11 + $0x38] sm:$0xff] %v3802_v1 }
 0x718   : > { %v3806_v62 = vpop.f32.mrb[108].mxu0 }
 0x719   : > { %v3807_v11 = vadd.f32 %v4149_v50, %v3806_v62  ;;  %v4786_v2 = vpop.f32.mrb[109].mxu0 }
 0x71a   : > { %v3809_v31 = vpop.f32.mrb[110].mxu0 }
 0x71b   : > { %3836 = vst [vmem:[%s6442_s11 + $0x40] sm:$0xff] %v3807_v11  ;;  %v3810_v47 = vadd.f32 %v4149_v50, %v3809_v31  ;;  %v4787_v3 = vpop.f32.mrb[111].mxu0 }
 0x71d   : > { %3837 = vst [vmem:[%s6442_s11 + $0x48] sm:$0xff] %v3810_v47 }
 0x720   : > { %v3814_v16 = vpop.f32.mrb[112].mxu0 }
 0x721   : > { %v3815_v33 = vadd.f32 %v4149_v50, %v3814_v16  ;;  %v4790_v58 = vpop.f32.mrb[113].mxu0 }
 0x722   : > { %v3817_v34 = vpop.f32.mrb[114].mxu0 }
 0x723   : > { %3838 = vst [vmem:[%s6442_s11 + $0x50] sm:$0xff] %v3815_v33  ;;  %v3818_v7 = vadd.f32 %v4149_v50, %v3817_v34  ;;  %v4791_v44 = vpop.f32.mrb[115].mxu0 }
 0x725   : > { %3839 = vst [vmem:[%s6442_s11 + $0x58] sm:$0xff] %v3818_v7 }
 0x728   : > { %v3822_v42 = vpop.f32.mrb[116].mxu0 }
 0x729   : > { %v3823_v29 = vadd.f32 %v4149_v50, %v3822_v42  ;;  %v4794_v18 = vpop.f32.mrb[117].mxu0 }
 0x72a   : > { %v3825_v55 = vpop.f32.mrb[118].mxu0 }
 0x72b   : > { %3840 = vst [vmem:[%s6442_s11 + $0x60] sm:$0xff] %v3823_v29  ;;  %v4795_v59 = vpop.f32.mrb[119].mxu0 }
 0x72c PF: > { %p15_p9 = scmp.ge.s32.totalorder %s5109_s9, 4   ;;  %s6476_s27 = smov %s5039_s28 }
 0x72d   : > { %s6477_s28 = smov %s5118_s12  ;;  %s6478_s29 = smov %s5109_s9 }
 0x72e   :  { %17 = sbr.rel (!%p15_p9) target bundleno = 2 (0x2), region = 135 }

</bundles_post_ra>
